<compile_context>
chip_gen: v5e
topology: v5e:2x2
jax: 0.10.0
libtpu: 0.0.40
codegen_flags: <defaults>
</compile_context>

<pallas_src>
import functools
import math

import jax
import jax.numpy as jnp
from jax.experimental import pallas as pl
from jax.experimental.pallas import tpu as pltpu

_VMEM = pl.BlockSpec(memory_space=pltpu.MemorySpace.VMEM)


def _sigmoid(x):
    # exp -> EUP, approx reciprocal -> EUP vrcp: keeps the serial gate chain
    # off the VPU Newton-refine multiply sequence.
    return pl.reciprocal(1.0 + jnp.exp(-x), approx=True)


# ------------------------------ fused kernel --------------------------------

def _fused_forward_kernel(adj_ref, x_ref, w1_ref, b1_ref, w2_ref, b2_ref,
                          wih_ref, bih_ref, bhh_ref,
                          whh_r_ref, whh_z_ref, whh_n_ref,
                          wfc_ref, bfc_ref, o_ref, *, B, T, H):
    bf = jnp.bfloat16
    f32 = jnp.float32

    # -------- 2-layer GCN: relu(A (relu(A (X W1) + b1) W2) + b2) --------
    adj = adj_ref[...]                                   # (N, N) bf16, pre-normalized
    h = jnp.dot(x_ref[...].astype(bf), w1_ref[...], preferred_element_type=f32)
    h = jnp.dot(adj, h.astype(bf), preferred_element_type=f32) + b1_ref[...]
    h = jnp.maximum(h, 0.0)
    h = jnp.dot(h.astype(bf), w2_ref[...], preferred_element_type=f32)
    h = jnp.dot(adj, h.astype(bf), preferred_element_type=f32) + b2_ref[...]
    nodes = jnp.maximum(h, 0.0)                          # (N = B*T, H) f32

    # -------- GRU: input projection hoisted out of the recurrence --------
    # One (N, H) x (H, 3H) matmul covers every timestep and all three gates.
    gi = jnp.dot(nodes.astype(bf), wih_ref[...], preferred_element_type=f32) \
        + bih_ref[...]                                   # (N, 3H), b_ih folded in
    b_hh = bhh_ref[...]                                  # (1, 3H)

    # Gate lane split done ONCE (not per step).  b_hr / b_hz can be folded
    # into gi (they sit outside the r* product); b_hn must stay on the hidden
    # path, so broadcast it once here instead of every step.
    gi_r = (gi[:, 0:H] + b_hh[:, 0:H]).reshape(B, T, H)
    gi_z = (gi[:, H:2 * H] + b_hh[:, H:2 * H]).reshape(B, T, H)
    gi_n = gi[:, 2 * H:3 * H].reshape(B, T, H)
    b_hn = jnp.broadcast_to(b_hh[:, 2 * H:3 * H], (B, H))

    w_r = whh_r_ref[...]                                 # (H, H) bf16, per-gate:
    w_z = whh_z_ref[...]                                 # no per-step lane slicing
    w_n = whh_n_ref[...]

    h_t = jnp.zeros((B, H), f32)
    # Static Python unroll (T is a compile-time constant via functools.partial)
    # so every time/row index is static; gi_* slices don't depend on h_t and
    # can be hoisted/overlapped by the scheduler.
    for t in range(T):
        hb = h_t.astype(bf)
        gh_r = jnp.dot(hb, w_r, preferred_element_type=f32)
        gh_z = jnp.dot(hb, w_z, preferred_element_type=f32)
        gh_n = jnp.dot(hb, w_n, preferred_element_type=f32) + b_hn
        r = _sigmoid(gi_r[:, t, :] + gh_r)
        z = _sigmoid(gi_z[:, t, :] + gh_z)
        n = jnp.tanh(gi_n[:, t, :] + r * gh_n)
        h_t = (1.0 - z) * n + z * h_t

    # -------- FC head fused onto the last hidden state (f32) --------
    o_ref[...] = (jnp.dot(h_t, wfc_ref[...], preferred_element_type=f32)
                  + bfc_ref[...]).astype(o_ref.dtype)


# ------------------------------ kernel wrapper -------------------------------

def gcn_gru_forward(prep, x, adj_bf16, batch):
    """Fully fused forward.  `adj_bf16` is the pre-normalized adjacency,
    `prep` the pre-cast / pre-split inference params, `batch` only supplies
    its static length (mirrors x.view(batch.size(0), -1, 16))."""
    n = x.shape[0]
    b = batch.shape[0]
    hidden = prep["whh_r"].shape[0]
    out_dim = prep["w_fc"].shape[1]
    t = n // b
    kernel = functools.partial(_fused_forward_kernel, B=b, T=t, H=hidden)
    return pl.pallas_call(
        kernel,
        out_shape=jax.ShapeDtypeStruct((b, out_dim), jnp.float32),
        in_specs=[_VMEM] * 14,
        out_specs=_VMEM,
    )(adj_bf16, x,
      prep["w1"], prep["b1"], prep["w2"], prep["b2"],
      prep["w_ih"], prep["b_ih"], prep["b_hh"],
      prep["whh_r"], prep["whh_z"], prep["whh_n"],
      prep["w_fc"], prep["b_fc"])


def prepare_inference_params(p):
    """One-time (outside jit) layout prep: bf16 MXU operand copies, per-gate
    split of w_hh, (1, D) bias reshapes.  FC weight stays f32."""
    bf = jnp.bfloat16
    hidden = p["w_hh"].shape[0]
    return {
        "w1": p["w1"].astype(bf), "b1": p["b1"].reshape(1, -1),
        "w2": p["w2"].astype(bf), "b2": p["b2"].reshape(1, -1),
        "w_ih": p["w_ih"].astype(bf),
        "b_ih": p["b_ih"].reshape(1, -1),
        "b_hh": p["b_hh"].reshape(1, -1),
        "whh_r": p["w_hh"][:, 0:hidden].astype(bf),
        "whh_z": p["w_hh"][:, hidden:2 * hidden].astype(bf),
        "whh_n": p["w_hh"][:, 2 * hidden:3 * hidden].astype(bf),
        "w_fc": p["w_fc"], "b_fc": p["b_fc"].reshape(1, -1),
    }


# ------------------------------ plain-JAX glue -------------------------------

# TODO(synk): the edge_index -> dense normalized adjacency scatter-add is
# data-dependent and stays in plain JAX; it is computed ONCE per graph outside
# the jitted forward (static across calls), not per kernel invocation.
def normalized_adjacency(edge_index, num_nodes):
    """Dense D^{-1/2} (A + I) D^{-1/2}, matching torch_geometric GCNConv
    defaults (add_self_loops=True, symmetric norm, src -> dst flow).
    Assumes edge_index has no pre-existing self loops / duplicate edges."""
    src, dst = edge_index[0], edge_index[1]
    adj = jnp.zeros((num_nodes, num_nodes), jnp.float32)
    adj = adj.at[dst, src].add(1.0)
    adj = adj + jnp.eye(num_nodes, dtype=jnp.float32)
    deg = jnp.sum(adj, axis=1)
    d_inv_sqrt = jax.lax.rsqrt(jnp.maximum(deg, 1e-12))
    return adj * d_inv_sqrt[:, None] * d_inv_sqrt[None, :]


def prune_l1_unstructured(w, amount=0.4):
    """torch.nn.utils.prune.l1_unstructured + prune.remove: zero EXACTLY the
    k = round(amount * numel) smallest-|w| entries (exact-k like torch's
    topk-based mask, so threshold ties cannot over-prune)."""
    k = int(round(amount * w.size))
    if k == 0:
        return w
    flat = w.reshape(-1)
    order = jnp.argsort(jnp.abs(flat))               # ascending |w|
    mask = jnp.ones(flat.shape, dtype=bool).at[order[:k]].set(False)
    return (flat * mask).reshape(w.shape)


def init_params(key, in_channels, out_channels, hidden=16):
    ks = jax.random.split(key, 8)

    def uni(k, shape, fan_in):
        bound = 1.0 / math.sqrt(fan_in)
        return jax.random.uniform(k, shape, jnp.float32, -bound, bound)

    params = {
        # GCNConv weights, stored (in, out)
        "w1": uni(ks[0], (in_channels, hidden), in_channels),
        "b1": jnp.zeros((hidden,), jnp.float32),
        "w2": uni(ks[1], (hidden, hidden), hidden),
        "b2": jnp.zeros((hidden,), jnp.float32),
        # nn.GRU(16, 16, 1): gates fused along columns, PyTorch order r|z|n,
        # weights stored transposed (in, 3H)
        "w_ih": uni(ks[2], (hidden, 3 * hidden), hidden),
        "w_hh": uni(ks[3], (hidden, 3 * hidden), hidden),
        "b_ih": uni(ks[4], (3 * hidden,), hidden),
        "b_hh": uni(ks[5], (3 * hidden,), hidden),
        # nn.Linear(16, out_channels)
        "w_fc": uni(ks[6], (hidden, out_channels), hidden),
        "b_fc": uni(ks[7], (out_channels,), hidden),
    }
    # PruningMixin.apply_pruning(): only self.fc is a torch.nn.Linear, so 40%
    # L1-unstructured pruning hits fc.weight only.
    params["w_fc"] = prune_l1_unstructured(params["w_fc"], 0.4)
    return params


def reference_forward(params, x, edge_index, batch):
    """Pure-JAX f32 reference mirroring the PyTorch forward."""
    num_nodes = x.shape[0]
    b = batch.shape[0]
    hidden = params["w_hh"].shape[0]
    t = num_nodes // b

    adj = normalized_adjacency(edge_index, num_nodes)
    h = jnp.maximum(adj @ (x @ params["w1"]) + params["b1"], 0.0)
    h = jnp.maximum(adj @ (h @ params["w2"]) + params["b2"], 0.0)
    seq = h.reshape(b, t, hidden)

    H = hidden
    hstate = jnp.zeros((b, H), jnp.float32)
    for step in range(t):
        x_t = seq[:, step, :]
        gi = x_t @ params["w_ih"] + params["b_ih"]
        gh = hstate @ params["w_hh"] + params["b_hh"]
        r = jax.nn.sigmoid(gi[:, :H] + gh[:, :H])
        z = jax.nn.sigmoid(gi[:, H:2 * H] + gh[:, H:2 * H])
        n = jnp.tanh(gi[:, 2 * H:] + r * gh[:, 2 * H:])
        hstate = (1.0 - z) * n + z * hstate
    return hstate @ params["w_fc"] + params["b_fc"]


# ----------------------------------- main ------------------------------------

if __name__ == "__main__":
    in_channels, out_channels = 8, 4
    num_nodes, batch_size, hidden = 16, 2, 16          # -> seq length T = 8

    key = jax.random.PRNGKey(0)
    k_par, k_x = jax.random.split(key)
    params = init_params(k_par, in_channels, out_channels, hidden)

    x = jax.random.normal(k_x, (num_nodes, in_channels), jnp.float32)
    # ring graph over all nodes, both directions
    idx = jnp.arange(num_nodes, dtype=jnp.int32)
    nxt = (idx + 1) % num_nodes
    edge_index = jnp.concatenate(
        [jnp.stack([idx, nxt]), jnp.stack([nxt, idx])], axis=1)   # (2, 2N)
    batch = jnp.arange(batch_size, dtype=jnp.int32)   # model uses only batch.size(0)

    # Static-per-graph precompute, done ONCE outside the jitted forward.
    adj_bf16 = normalized_adjacency(edge_index, num_nodes).astype(jnp.bfloat16)
    prep = prepare_inference_params(params)

    fwd = jax.jit(gcn_gru_forward)
    out = fwd(prep, x, adj_bf16, batch)
    jax.block_until_ready(out)

    ref = reference_forward(params, x, edge_index, batch)
    assert out.shape == (batch_size, out_channels)
    assert bool(jnp.all(jnp.isfinite(out)))
    # bf16 MXU operands with f32 accumulation (perf-review item): tolerance
    # loosened from 1e-2 to 2e-2 vs the pure-f32 reference.
    assert jnp.allclose(out, ref, rtol=2e-2, atol=2e-2), (out, ref)
    print("KERNEL_OK")
</pallas_src>

<mosaic_0001>
module attributes {stable_mosaic.version = 11 : i64} {
  func.func @_fused_forward_kernel(%arg0: memref<16x16xbf16, #tpu.memory_space<vmem>>, %arg1: memref<16x8xf32, #tpu.memory_space<vmem>>, %arg2: memref<8x16xbf16, #tpu.memory_space<vmem>>, %arg3: memref<1x16xf32, #tpu.memory_space<vmem>>, %arg4: memref<16x16xbf16, #tpu.memory_space<vmem>>, %arg5: memref<1x16xf32, #tpu.memory_space<vmem>>, %arg6: memref<16x48xbf16, #tpu.memory_space<vmem>>, %arg7: memref<1x48xf32, #tpu.memory_space<vmem>>, %arg8: memref<1x48xf32, #tpu.memory_space<vmem>>, %arg9: memref<16x16xbf16, #tpu.memory_space<vmem>>, %arg10: memref<16x16xbf16, #tpu.memory_space<vmem>>, %arg11: memref<16x16xbf16, #tpu.memory_space<vmem>>, %arg12: memref<16x4xf32, #tpu.memory_space<vmem>>, %arg13: memref<1x4xf32, #tpu.memory_space<vmem>>, %arg14: memref<2x4xf32, #tpu.memory_space<vmem>>) attributes {dimension_semantics = [], scalar_prefetch = 0 : i64, scratch_operands = 0 : i64, tpu.core_type = #tpu.core_type<tc>} {
    %c0 = arith.constant 0 : index
    %c0_0 = arith.constant 0 : index
    %0 = vector.load %arg0[%c0, %c0_0] : memref<16x16xbf16, #tpu.memory_space<vmem>>, vector<16x16xbf16>
    %c0_1 = arith.constant 0 : index
    %c0_2 = arith.constant 0 : index
    %1 = vector.load %arg1[%c0_1, %c0_2] : memref<16x8xf32, #tpu.memory_space<vmem>>, vector<16x8xf32>
    %2 = arith.truncf %1 : vector<16x8xf32> to vector<16x8xbf16>
    %c0_3 = arith.constant 0 : index
    %c0_4 = arith.constant 0 : index
    %3 = vector.load %arg2[%c0_3, %c0_4] : memref<8x16xbf16, #tpu.memory_space<vmem>>, vector<8x16xbf16>
    %cst = arith.constant dense<0.000000e+00> : vector<16x16xf32>
    %4 = tpu.matmul %2, %3, %cst {dimension_numbers = #tpu.dot_dimension_numbers<[1], [0], [0], [1], [0, 0, 1, 1], [], []>} : vector<16x8xbf16>, vector<8x16xbf16>, vector<16x16xf32> -> vector<16x16xf32>
    %5 = arith.truncf %4 : vector<16x16xf32> to vector<16x16xbf16>
    %cst_5 = arith.constant dense<0.000000e+00> : vector<16x16xf32>
    %6 = tpu.matmul %0, %5, %cst_5 {dimension_numbers = #tpu.dot_dimension_numbers<[1], [0], [0], [1], [0, 0, 1, 1], [], []>} : vector<16x16xbf16>, vector<16x16xbf16>, vector<16x16xf32> -> vector<16x16xf32>
    %c0_6 = arith.constant 0 : index
    %c0_7 = arith.constant 0 : index
    %7 = vector.load %arg3[%c0_6, %c0_7] : memref<1x16xf32, #tpu.memory_space<vmem>>, vector<1x16xf32>
    %8 = vector.broadcast %7 : vector<1x16xf32> to vector<16x16xf32>
    %9 = arith.addf %6, %8 : vector<16x16xf32>
    %cst_8 = arith.constant 0.000000e+00 : f32
    %10 = vector.broadcast %cst_8 : f32 to vector<16x16xf32>
    %11 = arith.maximumf %9, %10 : vector<16x16xf32>
    %12 = arith.truncf %11 : vector<16x16xf32> to vector<16x16xbf16>
    %c0_9 = arith.constant 0 : index
    %c0_10 = arith.constant 0 : index
    %13 = vector.load %arg4[%c0_9, %c0_10] : memref<16x16xbf16, #tpu.memory_space<vmem>>, vector<16x16xbf16>
    %cst_11 = arith.constant dense<0.000000e+00> : vector<16x16xf32>
    %14 = tpu.matmul %12, %13, %cst_11 {dimension_numbers = #tpu.dot_dimension_numbers<[1], [0], [0], [1], [0, 0, 1, 1], [], []>} : vector<16x16xbf16>, vector<16x16xbf16>, vector<16x16xf32> -> vector<16x16xf32>
    %15 = arith.truncf %14 : vector<16x16xf32> to vector<16x16xbf16>
    %cst_12 = arith.constant dense<0.000000e+00> : vector<16x16xf32>
    %16 = tpu.matmul %0, %15, %cst_12 {dimension_numbers = #tpu.dot_dimension_numbers<[1], [0], [0], [1], [0, 0, 1, 1], [], []>} : vector<16x16xbf16>, vector<16x16xbf16>, vector<16x16xf32> -> vector<16x16xf32>
    %c0_13 = arith.constant 0 : index
    %c0_14 = arith.constant 0 : index
    %17 = vector.load %arg5[%c0_13, %c0_14] : memref<1x16xf32, #tpu.memory_space<vmem>>, vector<1x16xf32>
    %18 = vector.broadcast %17 : vector<1x16xf32> to vector<16x16xf32>
    %19 = arith.addf %16, %18 : vector<16x16xf32>
    %cst_15 = arith.constant 0.000000e+00 : f32
    %20 = vector.broadcast %cst_15 : f32 to vector<16x16xf32>
    %21 = arith.maximumf %19, %20 : vector<16x16xf32>
    %22 = arith.truncf %21 : vector<16x16xf32> to vector<16x16xbf16>
    %c0_16 = arith.constant 0 : index
    %c0_17 = arith.constant 0 : index
    %23 = vector.load %arg6[%c0_16, %c0_17] : memref<16x48xbf16, #tpu.memory_space<vmem>>, vector<16x48xbf16>
    %cst_18 = arith.constant dense<0.000000e+00> : vector<16x48xf32>
    %24 = tpu.matmul %22, %23, %cst_18 {dimension_numbers = #tpu.dot_dimension_numbers<[1], [0], [0], [1], [0, 0, 1, 1], [], []>} : vector<16x16xbf16>, vector<16x48xbf16>, vector<16x48xf32> -> vector<16x48xf32>
    %c0_19 = arith.constant 0 : index
    %c0_20 = arith.constant 0 : index
    %25 = vector.load %arg7[%c0_19, %c0_20] : memref<1x48xf32, #tpu.memory_space<vmem>>, vector<1x48xf32>
    %26 = vector.broadcast %25 : vector<1x48xf32> to vector<16x48xf32>
    %27 = arith.addf %24, %26 : vector<16x48xf32>
    %c0_21 = arith.constant 0 : index
    %c0_22 = arith.constant 0 : index
    %28 = vector.load %arg8[%c0_21, %c0_22] : memref<1x48xf32, #tpu.memory_space<vmem>>, vector<1x48xf32>
    %29 = vector.extract_strided_slice %27 {offsets = [0, 0], sizes = [16, 16], strides = [1, 1]} : vector<16x48xf32> to vector<16x16xf32>
    %30 = vector.extract_strided_slice %28 {offsets = [0, 0], sizes = [1, 16], strides = [1, 1]} : vector<1x48xf32> to vector<1x16xf32>
    %31 = vector.broadcast %30 : vector<1x16xf32> to vector<16x16xf32>
    %32 = arith.addf %29, %31 : vector<16x16xf32>
    %33 = vector.shape_cast %32 : vector<16x16xf32> to vector<2x8x16xf32>
    %34 = vector.extract_strided_slice %27 {offsets = [0, 16], sizes = [16, 16], strides = [1, 1]} : vector<16x48xf32> to vector<16x16xf32>
    %35 = vector.extract_strided_slice %28 {offsets = [0, 16], sizes = [1, 16], strides = [1, 1]} : vector<1x48xf32> to vector<1x16xf32>
    %36 = vector.broadcast %35 : vector<1x16xf32> to vector<16x16xf32>
    %37 = arith.addf %34, %36 : vector<16x16xf32>
    %38 = vector.shape_cast %37 : vector<16x16xf32> to vector<2x8x16xf32>
    %39 = vector.extract_strided_slice %27 {offsets = [0, 32], sizes = [16, 16], strides = [1, 1]} : vector<16x48xf32> to vector<16x16xf32>
    %40 = vector.shape_cast %39 : vector<16x16xf32> to vector<2x8x16xf32>
    %41 = vector.extract_strided_slice %28 {offsets = [0, 32], sizes = [1, 16], strides = [1, 1]} : vector<1x48xf32> to vector<1x16xf32>
    %42 = vector.shape_cast %41 : vector<1x16xf32> to vector<1x16xf32>
    %43 = vector.broadcast %42 : vector<1x16xf32> to vector<2x16xf32>
    %c0_23 = arith.constant 0 : index
    %c0_24 = arith.constant 0 : index
    %44 = vector.load %arg9[%c0_23, %c0_24] : memref<16x16xbf16, #tpu.memory_space<vmem>>, vector<16x16xbf16>
    %c0_25 = arith.constant 0 : index
    %c0_26 = arith.constant 0 : index
    %45 = vector.load %arg10[%c0_25, %c0_26] : memref<16x16xbf16, #tpu.memory_space<vmem>>, vector<16x16xbf16>
    %c0_27 = arith.constant 0 : index
    %c0_28 = arith.constant 0 : index
    %46 = vector.load %arg11[%c0_27, %c0_28] : memref<16x16xbf16, #tpu.memory_space<vmem>>, vector<16x16xbf16>
    %cst_29 = arith.constant 0.000000e+00 : f32
    %47 = vector.broadcast %cst_29 : f32 to vector<2x16xf32>
    %48 = arith.truncf %47 : vector<2x16xf32> to vector<2x16xbf16>
    %cst_30 = arith.constant dense<0.000000e+00> : vector<2x16xf32>
    %49 = tpu.matmul %48, %44, %cst_30 {dimension_numbers = #tpu.dot_dimension_numbers<[1], [0], [0], [1], [0, 0, 1, 1], [], []>} : vector<2x16xbf16>, vector<16x16xbf16>, vector<2x16xf32> -> vector<2x16xf32>
    %cst_31 = arith.constant dense<0.000000e+00> : vector<2x16xf32>
    %50 = tpu.matmul %48, %45, %cst_31 {dimension_numbers = #tpu.dot_dimension_numbers<[1], [0], [0], [1], [0, 0, 1, 1], [], []>} : vector<2x16xbf16>, vector<16x16xbf16>, vector<2x16xf32> -> vector<2x16xf32>
    %cst_32 = arith.constant dense<0.000000e+00> : vector<2x16xf32>
    %51 = tpu.matmul %48, %46, %cst_32 {dimension_numbers = #tpu.dot_dimension_numbers<[1], [0], [0], [1], [0, 0, 1, 1], [], []>} : vector<2x16xbf16>, vector<16x16xbf16>, vector<2x16xf32> -> vector<2x16xf32>
    %52 = arith.addf %51, %43 : vector<2x16xf32>
    %53 = vector.extract_strided_slice %33 {offsets = [0, 0, 0], sizes = [2, 1, 16], strides = [1, 1, 1]} : vector<2x8x16xf32> to vector<2x1x16xf32>
    %54 = vector.shape_cast %53 : vector<2x1x16xf32> to vector<2x16xf32>
    %55 = arith.addf %54, %49 : vector<2x16xf32>
    %cst_33 = arith.constant 0.000000e+00 : f32
    %56 = vector.broadcast %cst_33 : f32 to vector<2x16xf32>
    %57 = arith.subf %56, %55 : vector<2x16xf32>
    %58 = math.exp %57 : vector<2x16xf32>
    %cst_34 = arith.constant 1.000000e+00 : f32
    %59 = vector.broadcast %cst_34 : f32 to vector<2x16xf32>
    %60 = arith.addf %59, %58 : vector<2x16xf32>
    %61 = tpu.reciprocal %60 {approx = true} : vector<2x16xf32> -> vector<2x16xf32>
    %62 = vector.extract_strided_slice %38 {offsets = [0, 0, 0], sizes = [2, 1, 16], strides = [1, 1, 1]} : vector<2x8x16xf32> to vector<2x1x16xf32>
    %63 = vector.shape_cast %62 : vector<2x1x16xf32> to vector<2x16xf32>
    %64 = arith.addf %63, %50 : vector<2x16xf32>
    %cst_35 = arith.constant 0.000000e+00 : f32
    %65 = vector.broadcast %cst_35 : f32 to vector<2x16xf32>
    %66 = arith.subf %65, %64 : vector<2x16xf32>
    %67 = math.exp %66 : vector<2x16xf32>
    %cst_36 = arith.constant 1.000000e+00 : f32
    %68 = vector.broadcast %cst_36 : f32 to vector<2x16xf32>
    %69 = arith.addf %68, %67 : vector<2x16xf32>
    %70 = tpu.reciprocal %69 {approx = true} : vector<2x16xf32> -> vector<2x16xf32>
    %71 = vector.extract_strided_slice %40 {offsets = [0, 0, 0], sizes = [2, 1, 16], strides = [1, 1, 1]} : vector<2x8x16xf32> to vector<2x1x16xf32>
    %72 = vector.shape_cast %71 : vector<2x1x16xf32> to vector<2x16xf32>
    %73 = arith.mulf %61, %52 : vector<2x16xf32>
    %74 = arith.addf %72, %73 : vector<2x16xf32>
    %75 = math.tanh %74 : vector<2x16xf32>
    %cst_37 = arith.constant 1.000000e+00 : f32
    %76 = vector.broadcast %cst_37 : f32 to vector<2x16xf32>
    %77 = arith.subf %76, %70 : vector<2x16xf32>
    %78 = arith.mulf %77, %75 : vector<2x16xf32>
    %79 = arith.mulf %70, %47 : vector<2x16xf32>
    %80 = arith.addf %78, %79 : vector<2x16xf32>
    %81 = arith.truncf %80 : vector<2x16xf32> to vector<2x16xbf16>
    %cst_38 = arith.constant dense<0.000000e+00> : vector<2x16xf32>
    %82 = tpu.matmul %81, %44, %cst_38 {dimension_numbers = #tpu.dot_dimension_numbers<[1], [0], [0], [1], [0, 0, 1, 1], [], []>} : vector<2x16xbf16>, vector<16x16xbf16>, vector<2x16xf32> -> vector<2x16xf32>
    %cst_39 = arith.constant dense<0.000000e+00> : vector<2x16xf32>
    %83 = tpu.matmul %81, %45, %cst_39 {dimension_numbers = #tpu.dot_dimension_numbers<[1], [0], [0], [1], [0, 0, 1, 1], [], []>} : vector<2x16xbf16>, vector<16x16xbf16>, vector<2x16xf32> -> vector<2x16xf32>
    %cst_40 = arith.constant dense<0.000000e+00> : vector<2x16xf32>
    %84 = tpu.matmul %81, %46, %cst_40 {dimension_numbers = #tpu.dot_dimension_numbers<[1], [0], [0], [1], [0, 0, 1, 1], [], []>} : vector<2x16xbf16>, vector<16x16xbf16>, vector<2x16xf32> -> vector<2x16xf32>
    %85 = arith.addf %84, %43 : vector<2x16xf32>
    %86 = vector.extract_strided_slice %33 {offsets = [0, 1, 0], sizes = [2, 1, 16], strides = [1, 1, 1]} : vector<2x8x16xf32> to vector<2x1x16xf32>
    %87 = vector.shape_cast %86 : vector<2x1x16xf32> to vector<2x16xf32>
    %88 = arith.addf %87, %82 : vector<2x16xf32>
    %cst_41 = arith.constant 0.000000e+00 : f32
    %89 = vector.broadcast %cst_41 : f32 to vector<2x16xf32>
    %90 = arith.subf %89, %88 : vector<2x16xf32>
    %91 = math.exp %90 : vector<2x16xf32>
    %cst_42 = arith.constant 1.000000e+00 : f32
    %92 = vector.broadcast %cst_42 : f32 to vector<2x16xf32>
    %93 = arith.addf %92, %91 : vector<2x16xf32>
    %94 = tpu.reciprocal %93 {approx = true} : vector<2x16xf32> -> vector<2x16xf32>
    %95 = vector.extract_strided_slice %38 {offsets = [0, 1, 0], sizes = [2, 1, 16], strides = [1, 1, 1]} : vector<2x8x16xf32> to vector<2x1x16xf32>
    %96 = vector.shape_cast %95 : vector<2x1x16xf32> to vector<2x16xf32>
    %97 = arith.addf %96, %83 : vector<2x16xf32>
    %cst_43 = arith.constant 0.000000e+00 : f32
    %98 = vector.broadcast %cst_43 : f32 to vector<2x16xf32>
    %99 = arith.subf %98, %97 : vector<2x16xf32>
    %100 = math.exp %99 : vector<2x16xf32>
    %cst_44 = arith.constant 1.000000e+00 : f32
    %101 = vector.broadcast %cst_44 : f32 to vector<2x16xf32>
    %102 = arith.addf %101, %100 : vector<2x16xf32>
    %103 = tpu.reciprocal %102 {approx = true} : vector<2x16xf32> -> vector<2x16xf32>
    %104 = vector.extract_strided_slice %40 {offsets = [0, 1, 0], sizes = [2, 1, 16], strides = [1, 1, 1]} : vector<2x8x16xf32> to vector<2x1x16xf32>
    %105 = vector.shape_cast %104 : vector<2x1x16xf32> to vector<2x16xf32>
    %106 = arith.mulf %94, %85 : vector<2x16xf32>
    %107 = arith.addf %105, %106 : vector<2x16xf32>
    %108 = math.tanh %107 : vector<2x16xf32>
    %cst_45 = arith.constant 1.000000e+00 : f32
    %109 = vector.broadcast %cst_45 : f32 to vector<2x16xf32>
    %110 = arith.subf %109, %103 : vector<2x16xf32>
    %111 = arith.mulf %110, %108 : vector<2x16xf32>
    %112 = arith.mulf %103, %80 : vector<2x16xf32>
    %113 = arith.addf %111, %112 : vector<2x16xf32>
    %114 = arith.truncf %113 : vector<2x16xf32> to vector<2x16xbf16>
    %cst_46 = arith.constant dense<0.000000e+00> : vector<2x16xf32>
    %115 = tpu.matmul %114, %44, %cst_46 {dimension_numbers = #tpu.dot_dimension_numbers<[1], [0], [0], [1], [0, 0, 1, 1], [], []>} : vector<2x16xbf16>, vector<16x16xbf16>, vector<2x16xf32> -> vector<2x16xf32>
    %cst_47 = arith.constant dense<0.000000e+00> : vector<2x16xf32>
    %116 = tpu.matmul %114, %45, %cst_47 {dimension_numbers = #tpu.dot_dimension_numbers<[1], [0], [0], [1], [0, 0, 1, 1], [], []>} : vector<2x16xbf16>, vector<16x16xbf16>, vector<2x16xf32> -> vector<2x16xf32>
    %cst_48 = arith.constant dense<0.000000e+00> : vector<2x16xf32>
    %117 = tpu.matmul %114, %46, %cst_48 {dimension_numbers = #tpu.dot_dimension_numbers<[1], [0], [0], [1], [0, 0, 1, 1], [], []>} : vector<2x16xbf16>, vector<16x16xbf16>, vector<2x16xf32> -> vector<2x16xf32>
    %118 = arith.addf %117, %43 : vector<2x16xf32>
    %119 = vector.extract_strided_slice %33 {offsets = [0, 2, 0], sizes = [2, 1, 16], strides = [1, 1, 1]} : vector<2x8x16xf32> to vector<2x1x16xf32>
    %120 = vector.shape_cast %119 : vector<2x1x16xf32> to vector<2x16xf32>
    %121 = arith.addf %120, %115 : vector<2x16xf32>
    %cst_49 = arith.constant 0.000000e+00 : f32
    %122 = vector.broadcast %cst_49 : f32 to vector<2x16xf32>
    %123 = arith.subf %122, %121 : vector<2x16xf32>
    %124 = math.exp %123 : vector<2x16xf32>
    %cst_50 = arith.constant 1.000000e+00 : f32
    %125 = vector.broadcast %cst_50 : f32 to vector<2x16xf32>
    %126 = arith.addf %125, %124 : vector<2x16xf32>
    %127 = tpu.reciprocal %126 {approx = true} : vector<2x16xf32> -> vector<2x16xf32>
    %128 = vector.extract_strided_slice %38 {offsets = [0, 2, 0], sizes = [2, 1, 16], strides = [1, 1, 1]} : vector<2x8x16xf32> to vector<2x1x16xf32>
    %129 = vector.shape_cast %128 : vector<2x1x16xf32> to vector<2x16xf32>
    %130 = arith.addf %129, %116 : vector<2x16xf32>
    %cst_51 = arith.constant 0.000000e+00 : f32
    %131 = vector.broadcast %cst_51 : f32 to vector<2x16xf32>
    %132 = arith.subf %131, %130 : vector<2x16xf32>
    %133 = math.exp %132 : vector<2x16xf32>
    %cst_52 = arith.constant 1.000000e+00 : f32
    %134 = vector.broadcast %cst_52 : f32 to vector<2x16xf32>
    %135 = arith.addf %134, %133 : vector<2x16xf32>
    %136 = tpu.reciprocal %135 {approx = true} : vector<2x16xf32> -> vector<2x16xf32>
    %137 = vector.extract_strided_slice %40 {offsets = [0, 2, 0], sizes = [2, 1, 16], strides = [1, 1, 1]} : vector<2x8x16xf32> to vector<2x1x16xf32>
    %138 = vector.shape_cast %137 : vector<2x1x16xf32> to vector<2x16xf32>
    %139 = arith.mulf %127, %118 : vector<2x16xf32>
    %140 = arith.addf %138, %139 : vector<2x16xf32>
    %141 = math.tanh %140 : vector<2x16xf32>
    %cst_53 = arith.constant 1.000000e+00 : f32
    %142 = vector.broadcast %cst_53 : f32 to vector<2x16xf32>
    %143 = arith.subf %142, %136 : vector<2x16xf32>
    %144 = arith.mulf %143, %141 : vector<2x16xf32>
    %145 = arith.mulf %136, %113 : vector<2x16xf32>
    %146 = arith.addf %144, %145 : vector<2x16xf32>
    %147 = arith.truncf %146 : vector<2x16xf32> to vector<2x16xbf16>
    %cst_54 = arith.constant dense<0.000000e+00> : vector<2x16xf32>
    %148 = tpu.matmul %147, %44, %cst_54 {dimension_numbers = #tpu.dot_dimension_numbers<[1], [0], [0], [1], [0, 0, 1, 1], [], []>} : vector<2x16xbf16>, vector<16x16xbf16>, vector<2x16xf32> -> vector<2x16xf32>
    %cst_55 = arith.constant dense<0.000000e+00> : vector<2x16xf32>
    %149 = tpu.matmul %147, %45, %cst_55 {dimension_numbers = #tpu.dot_dimension_numbers<[1], [0], [0], [1], [0, 0, 1, 1], [], []>} : vector<2x16xbf16>, vector<16x16xbf16>, vector<2x16xf32> -> vector<2x16xf32>
    %cst_56 = arith.constant dense<0.000000e+00> : vector<2x16xf32>
    %150 = tpu.matmul %147, %46, %cst_56 {dimension_numbers = #tpu.dot_dimension_numbers<[1], [0], [0], [1], [0, 0, 1, 1], [], []>} : vector<2x16xbf16>, vector<16x16xbf16>, vector<2x16xf32> -> vector<2x16xf32>
    %151 = arith.addf %150, %43 : vector<2x16xf32>
    %152 = vector.extract_strided_slice %33 {offsets = [0, 3, 0], sizes = [2, 1, 16], strides = [1, 1, 1]} : vector<2x8x16xf32> to vector<2x1x16xf32>
    %153 = vector.shape_cast %152 : vector<2x1x16xf32> to vector<2x16xf32>
    %154 = arith.addf %153, %148 : vector<2x16xf32>
    %cst_57 = arith.constant 0.000000e+00 : f32
    %155 = vector.broadcast %cst_57 : f32 to vector<2x16xf32>
    %156 = arith.subf %155, %154 : vector<2x16xf32>
    %157 = math.exp %156 : vector<2x16xf32>
    %cst_58 = arith.constant 1.000000e+00 : f32
    %158 = vector.broadcast %cst_58 : f32 to vector<2x16xf32>
    %159 = arith.addf %158, %157 : vector<2x16xf32>
    %160 = tpu.reciprocal %159 {approx = true} : vector<2x16xf32> -> vector<2x16xf32>
    %161 = vector.extract_strided_slice %38 {offsets = [0, 3, 0], sizes = [2, 1, 16], strides = [1, 1, 1]} : vector<2x8x16xf32> to vector<2x1x16xf32>
    %162 = vector.shape_cast %161 : vector<2x1x16xf32> to vector<2x16xf32>
    %163 = arith.addf %162, %149 : vector<2x16xf32>
    %cst_59 = arith.constant 0.000000e+00 : f32
    %164 = vector.broadcast %cst_59 : f32 to vector<2x16xf32>
    %165 = arith.subf %164, %163 : vector<2x16xf32>
    %166 = math.exp %165 : vector<2x16xf32>
    %cst_60 = arith.constant 1.000000e+00 : f32
    %167 = vector.broadcast %cst_60 : f32 to vector<2x16xf32>
    %168 = arith.addf %167, %166 : vector<2x16xf32>
    %169 = tpu.reciprocal %168 {approx = true} : vector<2x16xf32> -> vector<2x16xf32>
    %170 = vector.extract_strided_slice %40 {offsets = [0, 3, 0], sizes = [2, 1, 16], strides = [1, 1, 1]} : vector<2x8x16xf32> to vector<2x1x16xf32>
    %171 = vector.shape_cast %170 : vector<2x1x16xf32> to vector<2x16xf32>
    %172 = arith.mulf %160, %151 : vector<2x16xf32>
    %173 = arith.addf %171, %172 : vector<2x16xf32>
    %174 = math.tanh %173 : vector<2x16xf32>
    %cst_61 = arith.constant 1.000000e+00 : f32
    %175 = vector.broadcast %cst_61 : f32 to vector<2x16xf32>
    %176 = arith.subf %175, %169 : vector<2x16xf32>
    %177 = arith.mulf %176, %174 : vector<2x16xf32>
    %178 = arith.mulf %169, %146 : vector<2x16xf32>
    %179 = arith.addf %177, %178 : vector<2x16xf32>
    %180 = arith.truncf %179 : vector<2x16xf32> to vector<2x16xbf16>
    %cst_62 = arith.constant dense<0.000000e+00> : vector<2x16xf32>
    %181 = tpu.matmul %180, %44, %cst_62 {dimension_numbers = #tpu.dot_dimension_numbers<[1], [0], [0], [1], [0, 0, 1, 1], [], []>} : vector<2x16xbf16>, vector<16x16xbf16>, vector<2x16xf32> -> vector<2x16xf32>
    %cst_63 = arith.constant dense<0.000000e+00> : vector<2x16xf32>
    %182 = tpu.matmul %180, %45, %cst_63 {dimension_numbers = #tpu.dot_dimension_numbers<[1], [0], [0], [1], [0, 0, 1, 1], [], []>} : vector<2x16xbf16>, vector<16x16xbf16>, vector<2x16xf32> -> vector<2x16xf32>
    %cst_64 = arith.constant dense<0.000000e+00> : vector<2x16xf32>
    %183 = tpu.matmul %180, %46, %cst_64 {dimension_numbers = #tpu.dot_dimension_numbers<[1], [0], [0], [1], [0, 0, 1, 1], [], []>} : vector<2x16xbf16>, vector<16x16xbf16>, vector<2x16xf32> -> vector<2x16xf32>
    %184 = arith.addf %183, %43 : vector<2x16xf32>
    %185 = vector.extract_strided_slice %33 {offsets = [0, 4, 0], sizes = [2, 1, 16], strides = [1, 1, 1]} : vector<2x8x16xf32> to vector<2x1x16xf32>
    %186 = vector.shape_cast %185 : vector<2x1x16xf32> to vector<2x16xf32>
    %187 = arith.addf %186, %181 : vector<2x16xf32>
    %cst_65 = arith.constant 0.000000e+00 : f32
    %188 = vector.broadcast %cst_65 : f32 to vector<2x16xf32>
    %189 = arith.subf %188, %187 : vector<2x16xf32>
    %190 = math.exp %189 : vector<2x16xf32>
    %cst_66 = arith.constant 1.000000e+00 : f32
    %191 = vector.broadcast %cst_66 : f32 to vector<2x16xf32>
    %192 = arith.addf %191, %190 : vector<2x16xf32>
    %193 = tpu.reciprocal %192 {approx = true} : vector<2x16xf32> -> vector<2x16xf32>
    %194 = vector.extract_strided_slice %38 {offsets = [0, 4, 0], sizes = [2, 1, 16], strides = [1, 1, 1]} : vector<2x8x16xf32> to vector<2x1x16xf32>
    %195 = vector.shape_cast %194 : vector<2x1x16xf32> to vector<2x16xf32>
    %196 = arith.addf %195, %182 : vector<2x16xf32>
    %cst_67 = arith.constant 0.000000e+00 : f32
    %197 = vector.broadcast %cst_67 : f32 to vector<2x16xf32>
    %198 = arith.subf %197, %196 : vector<2x16xf32>
    %199 = math.exp %198 : vector<2x16xf32>
    %cst_68 = arith.constant 1.000000e+00 : f32
    %200 = vector.broadcast %cst_68 : f32 to vector<2x16xf32>
    %201 = arith.addf %200, %199 : vector<2x16xf32>
    %202 = tpu.reciprocal %201 {approx = true} : vector<2x16xf32> -> vector<2x16xf32>
    %203 = vector.extract_strided_slice %40 {offsets = [0, 4, 0], sizes = [2, 1, 16], strides = [1, 1, 1]} : vector<2x8x16xf32> to vector<2x1x16xf32>
    %204 = vector.shape_cast %203 : vector<2x1x16xf32> to vector<2x16xf32>
    %205 = arith.mulf %193, %184 : vector<2x16xf32>
    %206 = arith.addf %204, %205 : vector<2x16xf32>
    %207 = math.tanh %206 : vector<2x16xf32>
    %cst_69 = arith.constant 1.000000e+00 : f32
    %208 = vector.broadcast %cst_69 : f32 to vector<2x16xf32>
    %209 = arith.subf %208, %202 : vector<2x16xf32>
    %210 = arith.mulf %209, %207 : vector<2x16xf32>
    %211 = arith.mulf %202, %179 : vector<2x16xf32>
    %212 = arith.addf %210, %211 : vector<2x16xf32>
    %213 = arith.truncf %212 : vector<2x16xf32> to vector<2x16xbf16>
    %cst_70 = arith.constant dense<0.000000e+00> : vector<2x16xf32>
    %214 = tpu.matmul %213, %44, %cst_70 {dimension_numbers = #tpu.dot_dimension_numbers<[1], [0], [0], [1], [0, 0, 1, 1], [], []>} : vector<2x16xbf16>, vector<16x16xbf16>, vector<2x16xf32> -> vector<2x16xf32>
    %cst_71 = arith.constant dense<0.000000e+00> : vector<2x16xf32>
    %215 = tpu.matmul %213, %45, %cst_71 {dimension_numbers = #tpu.dot_dimension_numbers<[1], [0], [0], [1], [0, 0, 1, 1], [], []>} : vector<2x16xbf16>, vector<16x16xbf16>, vector<2x16xf32> -> vector<2x16xf32>
    %cst_72 = arith.constant dense<0.000000e+00> : vector<2x16xf32>
    %216 = tpu.matmul %213, %46, %cst_72 {dimension_numbers = #tpu.dot_dimension_numbers<[1], [0], [0], [1], [0, 0, 1, 1], [], []>} : vector<2x16xbf16>, vector<16x16xbf16>, vector<2x16xf32> -> vector<2x16xf32>
    %217 = arith.addf %216, %43 : vector<2x16xf32>
    %218 = vector.extract_strided_slice %33 {offsets = [0, 5, 0], sizes = [2, 1, 16], strides = [1, 1, 1]} : vector<2x8x16xf32> to vector<2x1x16xf32>
    %219 = vector.shape_cast %218 : vector<2x1x16xf32> to vector<2x16xf32>
    %220 = arith.addf %219, %214 : vector<2x16xf32>
    %cst_73 = arith.constant 0.000000e+00 : f32
    %221 = vector.broadcast %cst_73 : f32 to vector<2x16xf32>
    %222 = arith.subf %221, %220 : vector<2x16xf32>
    %223 = math.exp %222 : vector<2x16xf32>
    %cst_74 = arith.constant 1.000000e+00 : f32
    %224 = vector.broadcast %cst_74 : f32 to vector<2x16xf32>
    %225 = arith.addf %224, %223 : vector<2x16xf32>
    %226 = tpu.reciprocal %225 {approx = true} : vector<2x16xf32> -> vector<2x16xf32>
    %227 = vector.extract_strided_slice %38 {offsets = [0, 5, 0], sizes = [2, 1, 16], strides = [1, 1, 1]} : vector<2x8x16xf32> to vector<2x1x16xf32>
    %228 = vector.shape_cast %227 : vector<2x1x16xf32> to vector<2x16xf32>
    %229 = arith.addf %228, %215 : vector<2x16xf32>
    %cst_75 = arith.constant 0.000000e+00 : f32
    %230 = vector.broadcast %cst_75 : f32 to vector<2x16xf32>
    %231 = arith.subf %230, %229 : vector<2x16xf32>
    %232 = math.exp %231 : vector<2x16xf32>
    %cst_76 = arith.constant 1.000000e+00 : f32
    %233 = vector.broadcast %cst_76 : f32 to vector<2x16xf32>
    %234 = arith.addf %233, %232 : vector<2x16xf32>
    %235 = tpu.reciprocal %234 {approx = true} : vector<2x16xf32> -> vector<2x16xf32>
    %236 = vector.extract_strided_slice %40 {offsets = [0, 5, 0], sizes = [2, 1, 16], strides = [1, 1, 1]} : vector<2x8x16xf32> to vector<2x1x16xf32>
    %237 = vector.shape_cast %236 : vector<2x1x16xf32> to vector<2x16xf32>
    %238 = arith.mulf %226, %217 : vector<2x16xf32>
    %239 = arith.addf %237, %238 : vector<2x16xf32>
    %240 = math.tanh %239 : vector<2x16xf32>
    %cst_77 = arith.constant 1.000000e+00 : f32
    %241 = vector.broadcast %cst_77 : f32 to vector<2x16xf32>
    %242 = arith.subf %241, %235 : vector<2x16xf32>
    %243 = arith.mulf %242, %240 : vector<2x16xf32>
    %244 = arith.mulf %235, %212 : vector<2x16xf32>
    %245 = arith.addf %243, %244 : vector<2x16xf32>
    %246 = arith.truncf %245 : vector<2x16xf32> to vector<2x16xbf16>
    %cst_78 = arith.constant dense<0.000000e+00> : vector<2x16xf32>
    %247 = tpu.matmul %246, %44, %cst_78 {dimension_numbers = #tpu.dot_dimension_numbers<[1], [0], [0], [1], [0, 0, 1, 1], [], []>} : vector<2x16xbf16>, vector<16x16xbf16>, vector<2x16xf32> -> vector<2x16xf32>
    %cst_79 = arith.constant dense<0.000000e+00> : vector<2x16xf32>
    %248 = tpu.matmul %246, %45, %cst_79 {dimension_numbers = #tpu.dot_dimension_numbers<[1], [0], [0], [1], [0, 0, 1, 1], [], []>} : vector<2x16xbf16>, vector<16x16xbf16>, vector<2x16xf32> -> vector<2x16xf32>
    %cst_80 = arith.constant dense<0.000000e+00> : vector<2x16xf32>
    %249 = tpu.matmul %246, %46, %cst_80 {dimension_numbers = #tpu.dot_dimension_numbers<[1], [0], [0], [1], [0, 0, 1, 1], [], []>} : vector<2x16xbf16>, vector<16x16xbf16>, vector<2x16xf32> -> vector<2x16xf32>
    %250 = arith.addf %249, %43 : vector<2x16xf32>
    %251 = vector.extract_strided_slice %33 {offsets = [0, 6, 0], sizes = [2, 1, 16], strides = [1, 1, 1]} : vector<2x8x16xf32> to vector<2x1x16xf32>
    %252 = vector.shape_cast %251 : vector<2x1x16xf32> to vector<2x16xf32>
    %253 = arith.addf %252, %247 : vector<2x16xf32>
    %cst_81 = arith.constant 0.000000e+00 : f32
    %254 = vector.broadcast %cst_81 : f32 to vector<2x16xf32>
    %255 = arith.subf %254, %253 : vector<2x16xf32>
    %256 = math.exp %255 : vector<2x16xf32>
    %cst_82 = arith.constant 1.000000e+00 : f32
    %257 = vector.broadcast %cst_82 : f32 to vector<2x16xf32>
    %258 = arith.addf %257, %256 : vector<2x16xf32>
    %259 = tpu.reciprocal %258 {approx = true} : vector<2x16xf32> -> vector<2x16xf32>
    %260 = vector.extract_strided_slice %38 {offsets = [0, 6, 0], sizes = [2, 1, 16], strides = [1, 1, 1]} : vector<2x8x16xf32> to vector<2x1x16xf32>
    %261 = vector.shape_cast %260 : vector<2x1x16xf32> to vector<2x16xf32>
    %262 = arith.addf %261, %248 : vector<2x16xf32>
    %cst_83 = arith.constant 0.000000e+00 : f32
    %263 = vector.broadcast %cst_83 : f32 to vector<2x16xf32>
    %264 = arith.subf %263, %262 : vector<2x16xf32>
    %265 = math.exp %264 : vector<2x16xf32>
    %cst_84 = arith.constant 1.000000e+00 : f32
    %266 = vector.broadcast %cst_84 : f32 to vector<2x16xf32>
    %267 = arith.addf %266, %265 : vector<2x16xf32>
    %268 = tpu.reciprocal %267 {approx = true} : vector<2x16xf32> -> vector<2x16xf32>
    %269 = vector.extract_strided_slice %40 {offsets = [0, 6, 0], sizes = [2, 1, 16], strides = [1, 1, 1]} : vector<2x8x16xf32> to vector<2x1x16xf32>
    %270 = vector.shape_cast %269 : vector<2x1x16xf32> to vector<2x16xf32>
    %271 = arith.mulf %259, %250 : vector<2x16xf32>
    %272 = arith.addf %270, %271 : vector<2x16xf32>
    %273 = math.tanh %272 : vector<2x16xf32>
    %cst_85 = arith.constant 1.000000e+00 : f32
    %274 = vector.broadcast %cst_85 : f32 to vector<2x16xf32>
    %275 = arith.subf %274, %268 : vector<2x16xf32>
    %276 = arith.mulf %275, %273 : vector<2x16xf32>
    %277 = arith.mulf %268, %245 : vector<2x16xf32>
    %278 = arith.addf %276, %277 : vector<2x16xf32>
    %279 = arith.truncf %278 : vector<2x16xf32> to vector<2x16xbf16>
    %cst_86 = arith.constant dense<0.000000e+00> : vector<2x16xf32>
    %280 = tpu.matmul %279, %44, %cst_86 {dimension_numbers = #tpu.dot_dimension_numbers<[1], [0], [0], [1], [0, 0, 1, 1], [], []>} : vector<2x16xbf16>, vector<16x16xbf16>, vector<2x16xf32> -> vector<2x16xf32>
    %cst_87 = arith.constant dense<0.000000e+00> : vector<2x16xf32>
    %281 = tpu.matmul %279, %45, %cst_87 {dimension_numbers = #tpu.dot_dimension_numbers<[1], [0], [0], [1], [0, 0, 1, 1], [], []>} : vector<2x16xbf16>, vector<16x16xbf16>, vector<2x16xf32> -> vector<2x16xf32>
    %cst_88 = arith.constant dense<0.000000e+00> : vector<2x16xf32>
    %282 = tpu.matmul %279, %46, %cst_88 {dimension_numbers = #tpu.dot_dimension_numbers<[1], [0], [0], [1], [0, 0, 1, 1], [], []>} : vector<2x16xbf16>, vector<16x16xbf16>, vector<2x16xf32> -> vector<2x16xf32>
    %283 = arith.addf %282, %43 : vector<2x16xf32>
    %284 = vector.extract_strided_slice %33 {offsets = [0, 7, 0], sizes = [2, 1, 16], strides = [1, 1, 1]} : vector<2x8x16xf32> to vector<2x1x16xf32>
    %285 = vector.shape_cast %284 : vector<2x1x16xf32> to vector<2x16xf32>
    %286 = arith.addf %285, %280 : vector<2x16xf32>
    %cst_89 = arith.constant 0.000000e+00 : f32
    %287 = vector.broadcast %cst_89 : f32 to vector<2x16xf32>
    %288 = arith.subf %287, %286 : vector<2x16xf32>
    %289 = math.exp %288 : vector<2x16xf32>
    %cst_90 = arith.constant 1.000000e+00 : f32
    %290 = vector.broadcast %cst_90 : f32 to vector<2x16xf32>
    %291 = arith.addf %290, %289 : vector<2x16xf32>
    %292 = tpu.reciprocal %291 {approx = true} : vector<2x16xf32> -> vector<2x16xf32>
    %293 = vector.extract_strided_slice %38 {offsets = [0, 7, 0], sizes = [2, 1, 16], strides = [1, 1, 1]} : vector<2x8x16xf32> to vector<2x1x16xf32>
    %294 = vector.shape_cast %293 : vector<2x1x16xf32> to vector<2x16xf32>
    %295 = arith.addf %294, %281 : vector<2x16xf32>
    %cst_91 = arith.constant 0.000000e+00 : f32
    %296 = vector.broadcast %cst_91 : f32 to vector<2x16xf32>
    %297 = arith.subf %296, %295 : vector<2x16xf32>
    %298 = math.exp %297 : vector<2x16xf32>
    %cst_92 = arith.constant 1.000000e+00 : f32
    %299 = vector.broadcast %cst_92 : f32 to vector<2x16xf32>
    %300 = arith.addf %299, %298 : vector<2x16xf32>
    %301 = tpu.reciprocal %300 {approx = true} : vector<2x16xf32> -> vector<2x16xf32>
    %302 = vector.extract_strided_slice %40 {offsets = [0, 7, 0], sizes = [2, 1, 16], strides = [1, 1, 1]} : vector<2x8x16xf32> to vector<2x1x16xf32>
    %303 = vector.shape_cast %302 : vector<2x1x16xf32> to vector<2x16xf32>
    %304 = arith.mulf %292, %283 : vector<2x16xf32>
    %305 = arith.addf %303, %304 : vector<2x16xf32>
    %306 = math.tanh %305 : vector<2x16xf32>
    %cst_93 = arith.constant 1.000000e+00 : f32
    %307 = vector.broadcast %cst_93 : f32 to vector<2x16xf32>
    %308 = arith.subf %307, %301 : vector<2x16xf32>
    %309 = arith.mulf %308, %306 : vector<2x16xf32>
    %310 = arith.mulf %301, %278 : vector<2x16xf32>
    %311 = arith.addf %309, %310 : vector<2x16xf32>
    %c0_94 = arith.constant 0 : index
    %c0_95 = arith.constant 0 : index
    %312 = vector.load %arg12[%c0_94, %c0_95] : memref<16x4xf32, #tpu.memory_space<vmem>>, vector<16x4xf32>
    %cst_96 = arith.constant dense<0.000000e+00> : vector<2x4xf32>
    %313 = tpu.matmul %311, %312, %cst_96 {dimension_numbers = #tpu.dot_dimension_numbers<[1], [0], [0], [1], [0, 0, 1, 1], [], []>} : vector<2x16xf32>, vector<16x4xf32>, vector<2x4xf32> -> vector<2x4xf32>
    %c0_97 = arith.constant 0 : index
    %c0_98 = arith.constant 0 : index
    %314 = vector.load %arg13[%c0_97, %c0_98] : memref<1x4xf32, #tpu.memory_space<vmem>>, vector<1x4xf32>
    %315 = vector.broadcast %314 : vector<1x4xf32> to vector<2x4xf32>
    %316 = arith.addf %313, %315 : vector<2x4xf32>
    %c0_99 = arith.constant 0 : index
    %c0_100 = arith.constant 0 : index
    %317 = vector.load %arg14[%c0_99, %c0_100] : memref<2x4xf32, #tpu.memory_space<vmem>>, vector<2x4xf32>
    tpu.vector_store %arg14[%c0_99, %c0_100], %316 {strides = array<i32>} : memref<2x4xf32, #tpu.memory_space<vmem>>, vector<2x4xf32>,
    return
  }
}

</mosaic_0001>

<bundles_post_ra>
// kernel: gcn_gru_forward.1
= control target key start
LH: loop header
LB: loop body
LE: loop exit
PB: predicated region body
PF: predicated region fallthrough
CT: control target
= control target key end

     0   :  { %19 = vsyncpa [#allocation3], 0  ;;  %s2168_s0 = inlined_call_operand.vmem [shape: bf16[16,16], index: 0, kind: input, shape index: {}]   ;;  %s2169_s1 = inlined_call_operand.vmem [shape: f32[16,8], index: 1, kind: input, shape index: {}]   ;;  %s2170_s2 = inlined_call_operand.vmem [shape: bf16[8,16], index: 2, kind: input, shape index: {}]   ;;  %s2171_s3 = inlined_call_operand.hbm [shape: f32[1,16], index: 3, kind: input, shape index: {}]   ;;  %s2172_s4 = inlined_call_operand.vmem [shape: bf16[16,16], index: 4, kind: input, shape index: {}]   ;;  %s2173_s5 = inlined_call_operand.hbm [shape: f32[1,16], index: 5, kind: input, shape index: {}]   ;;  %s2174_s6 = inlined_call_operand.vmem [shape: bf16[16,48], index: 6, kind: input, shape index: {}]   ;;  %s2175_s7 = inlined_call_operand.vmem [shape: f32[1,48], index: 7, kind: input, shape index: {}]   ;;  %s2176_s8 = inlined_call_operand.vmem [shape: f32[1,48], index: 8, kind: input, shape index: {}]   ;;  %s2177_s9 = inlined_call_operand.vmem [shape: bf16[16,16], index: 9, kind: input, shape index: {}]   ;;  %s2178_s10 = inlined_call_operand.hbm [shape: bf16[16,16], index: 10, kind: input, shape index: {}]   ;;  %s2179_s11 = inlined_call_operand.hbm [shape: bf16[16,16], index: 11, kind: input, shape index: {}]   ;;  %s2180_s12 = inlined_call_operand.vmem [shape: f32[16,4], index: 12, kind: input, shape index: {}]   ;;  %s2181_s13 = inlined_call_operand.hbm [shape: f32[1,4], index: 13, kind: input, shape index: {}]   ;;  %s2182_s14 = inlined_call_operand.hbm [shape: f32[2,4], index: 14, kind: output, shape index: {}]  }
   0x1   :  { %20 = vsyncpa [#allocation6], 0 }
   0x2   :  { %21 = vsyncpa [#allocation9], 0  ;;  %s47_s15 = sshll.u32 %s2173_s5, 4  ;;  %s48_s15 = int_to_ptr.hbm [resolvable:$true] %s47_s15 }
   0x3   :  { %22 = vsyncpa [#allocation4], 0  ;;  %s1771_s16 = smov [#allocation5]   ;;  %s78_s20 = sshll.u32 %s2179_s11, 4  ;;  %s79_s20 = int_to_ptr.hbm [resolvable:$true] %s78_s20 }
   0x4   :  { %s49_s17 = sshll.u32 %s1771_s16, 4  ;;  %s1772_s21 = smov [#allocation8]   ;;  %s50_s17 = int_to_ptr.vmem [resolvable:$true] %s49_s17 }
   0x5   :  { %52 = dma.hbm_to_vmem [thread:$0]  %s48_s15, 16, %s50_s17, [#allocation6]  }
   0x6   :  { %s80_s22 = sshll.u32 %s1772_s21, 4  ;;  %s34_s25 = sshll.u32 %s2171_s3, 4  ;;  %s81_s22 = int_to_ptr.vmem [resolvable:$true] %s80_s22  ;;  %s35_s25 = int_to_ptr.hbm [resolvable:$true] %s34_s25 }
   0x7   :  { %s1773_s5 = smov 64   ;;  %s1774_s26 = smov 4  }
   0x8   :  { %86 = dma.hbm_to_vmem [thread:$0]  %s79_s20, 128, %s81_s22, [#allocation9], %s1773_s5, %s1773_s5, %s1774_s26  }
   0x9   :  { %s65_s29 = sshll.u32 %s2178_s10, 4  ;;  %s1775_s30 = smov [#allocation2]   ;;  %s66_s29 = int_to_ptr.hbm [resolvable:$true] %s65_s29 }
   0xa   :  { %s36_s15 = sshll.u32 %s1775_s30, 4  ;;  %s1776_s11 = smov [#allocation7]   ;;  %s37_s15 = int_to_ptr.vmem [resolvable:$true] %s36_s15 }
   0xb   :  { %39 = dma.hbm_to_vmem [thread:$0]  %s35_s25, 16, %s37_s15, [#allocation3]  }
   0xc   :  { %s67_s16 = sshll.u32 %s1776_s11, 4  ;;  %s94_s3 = sshll.u32 %s2181_s13, 4  ;;  %s68_s16 = int_to_ptr.vmem [resolvable:$true] %s67_s16  ;;  %s95_s3 = int_to_ptr.hbm [resolvable:$true] %s94_s3 }
   0xd   :  { %73 = dma.hbm_to_vmem [thread:$0]  %s66_s29, 128, %s68_s16, [#allocation6], %s1773_s5, %s1773_s5, %s1774_s26  }
   0xe   :  { %s1777_s19 = smov [#allocation10]  }
   0xf   :  { %s96_s20 = sshll.u32 %s1777_s19, 4  ;;  %s97_s20 = int_to_ptr.vmem [resolvable:$true] %s96_s20 }
  0x10   :  { %99 = dma.hbm_to_vmem [thread:$0]  %s95_s3, 16, %s97_s20, [#allocation9]  }
  0x11   :  { %1763 = dma.done.wait [#allocation3], 16  }
  0x12   :  { %1764 = vsyncadd [#allocation3], 4294967280 }
  0x13   :  { %1765 = dma.done.wait [#allocation6], 144  }
  0x14   :  { %1766 = vsyncadd [#allocation6], 4294967152 }
  0x15   :  { %1767 = dma.done.wait [#allocation9], 144  }
  0x16   :  { %1768 = vsyncadd [#allocation9], 4294967152  ;;  %vm131_vm0 = vcmask 1043456   ;;  %v126_v0 = vld [vmem:[%s2170_s2] sm:$0xf]  ;;  %v124_v2 = vld [vmem:[%s2169_s1 + $0x8] sm:$0xff] }
  0x17   :  { %v123_v1 = vld [vmem:[%s2169_s1] sm:$0xff]  ;;  %v133_v3 = vsel %vm131_vm0, %v126_v0, 0  ;;  %vm127_vm1 = vcmask 64512   ;;  %vm159_vm2 = vcmask 130048   ;;  %v1778_v20 = vmov 0   ;;  %v1906_v25 = vld [vmem:[#allocation8] sm:$0xff] }
  0x18   :  { %v125_v4 = vpack.c.bf16 %v124_v2, %v123_v1  ;;  %142 = vmatpush.bf16.msra.mxu0 %v133_v3  ;;  %v1435_v8 = vld [vmem:[%s2168_s0] sm:$0xff]  ;;  %s1779_s29 = smov 16   ;;  %s1782_s15 = smov 112   ;;  %vm408_vm3 = vcmask 1041409   ;;  %vm1363_vm4 = vcmask 25600  }
  0x19   :  { %v1436_v9 = vld [vmem:[%s2172_s4] sm:$0xff]  ;;  %s1372_s10 = sshll.u32 %s2182_s14, 4  ;;  %s1373_s10 = int_to_ptr.hbm [resolvable:$true] %s1372_s10 }
  0x1a   :  { %198 = vmatpush.bf16.msra.mxu2 %v1436_v9  ;;  %v1454_v11 = vld [vmem:[#allocation2] ss:$0 sm:$0xff]  ;;  %v1891_v18 = vld [vmem:[#allocation7] sm:$0xff]  ;;  %v1455_v30 = vld [vmem:[#allocation5] ss:$0 sm:$0xff] }
  0x1b   :  { %1384 = vmatmul.msk.bf16.vlgmr.msra.gmra.mxu0 %vm127_vm1, %v125_v4  ;;  %v1437_v19 = vld [vmem:[%s2174_s6] sm:$0xff] }
  0x1c   :  { %249 = vmatpush.bf16.msrb.mxu0 %v1437_v19  ;;  %v1901_v24 = vld [vmem:[%s2177_s9] sm:$0xff]  ;;  %s1780_s9 = smov 96  }
  0x1d   :  { %v1456_v26 = vld [vmem:[%s2176_s8] ss:$0 sm:$0xff] }
  0x1e   :  { %303 = vmatpush.bf16.msrb.mxu2 %v1891_v18  ;;  %315 = vrot.lane.b32.xlu0 %v1456_v26, %s1780_s9  ;;  %v1457_v41 = vld [vmem:[%s2175_s7] ss:$0 sm:$0xff]  ;;  %s1781_s7 = smov 32  }
  0x20   :  { %423 = vmatpush.bf16.msra.mxu0 %v1901_v24 }
  0x90   :  { %v1935_v57 = vpop.permute.xlu0 %315 }
  0x98   :  { %v144_v5 = vpop.f32.mrf.mxu0 }
  0xa0   :  { %v146_v6 = vpop.f32.mrf.mxu0 }
  0xa1   :  { %v149_v7 = vpack.c.bf16 %v146_v6, %v144_v5 }
  0xa3   :  { %170 = vmatpush.bf16.msra.mxu1 %v149_v7 }
  0xa6   :  { %1389 = vmatmul.msk.bf16.vlgmr.msra.gmra.mxu1 %vm159_vm2, %v1435_v8 }
  0xa7   :  { %284 = vmatpush.bf16.msrb.mxu1 %v1901_v24 }
  0xab   :  { %436 = vmatpush.bf16.msra.mxu1 %v1891_v18 }
  0xb6   :  { %285 = vmatmul.bf16.vlgmr.msrb.gmra.mxu1 %v1778_v20 }
  0xb7   :  { %578 = vmatpush.bf16.msrb.mxu1 %v1906_v25 }
 0x123   :  { %v172_v10 = vpop.f32.mrf.mxu1 }
 0x124   :  { %v173_v12 = vadd.f32 %v1454_v11, %v172_v10 }
 0x126   :  { %v177_v15 = vmax.f32 %v173_v12, 0.0 }
 0x12b   :  { %v174_v13 = vpop.f32.mrf.mxu1 }
 0x12c   :  { %v175_v14 = vadd.f32 %v1454_v11, %v174_v13 }
 0x12e   :  { %v178_v16 = vmax.f32 %v175_v14, 0.0 }
 0x130   :  { %v179_v17 = vpack.c.bf16 %v178_v16, %v177_v15 }
 0x132   :  { %1394 = vmatmul.msk.bf16.vlgmr.msra.gmra.mxu2 %vm159_vm2, %v179_v17 }
 0x133   :  { %449 = vmatpush.bf16.msra.mxu2 %v1906_v25  ;;  %v286_v37 = vpop.f32.mrf.mxu1 }
 0x134   :  { %v332_v50 = vrot.slane %v286_v37, 1 }
 0x13b   :  { %v288_v38 = vpop.f32.mrf.mxu1 }
 0x142   :  { %304 = vmatmul.bf16.vlgmr.msrb.gmra.mxu2 %v1778_v20 }
 0x143   :  { %685 = vmatpush.bf16.msrb.mxu2 %v1901_v24 }
 0x1b5   :  { %v200_v21 = vpop.f32.mrf.mxu2 }
 0x1bd   :  { %v202_v22 = vpop.f32.mrf.mxu2 }
 0x1be   :  { %v205_v23 = vpack.c.bf16 %v202_v22, %v200_v21 }
 0x1c0   :  { %217 = vmatpush.bf16.msra.mxu3 %v205_v23 }
 0x1c3   :  { %1395 = vmatmul.msk.bf16.vlgmr.msra.gmra.mxu3 %vm159_vm2, %v1435_v8 }
 0x1c4   :  { %325 = vmatpush.bf16.msrb.mxu3 %v1906_v25 }
 0x1c5   :  { %v305_v27 = vpop.f32.mrf.mxu2 }
 0x1c6   :  { %349 = vrot.lane.b32.xlu2 %v305_v27, %s1779_s29  ;;  %v348_v1 = vrot.slane %v305_v27, 1 }
 0x1c8   :  { %552 = vmatpush.bf16.msra.mxu3 %v1901_v24 }
 0x1cd   :  { %v307_v28 = vpop.f32.mrf.mxu2 }
 0x1d3   :  { %326 = vmatmul.bf16.vlgmr.msrb.gmra.mxu3 %v1778_v20 }
 0x1d4   :  { %698 = vmatpush.bf16.msrb.mxu3 %v1891_v18 }
 0x220   :  { %v350_v12 = vpop.permute.xlu2 %349 }
 0x246   :  { %v219_v29 = vpop.f32.mrf.mxu3 }
 0x247   :  { %v220_v31 = vadd.f32 %v1455_v30, %v219_v29 }
 0x249   :  { %v224_v34 = vmax.f32 %v220_v31, 0.0 }
 0x24e   :  { %v221_v32 = vpop.f32.mrf.mxu3 }
 0x24f   :  { %v222_v33 = vadd.f32 %v1455_v30, %v221_v32 }
 0x251   :  { %v225_v35 = vmax.f32 %v222_v33, 0.0 }
 0x253   :  { %v226_v36 = vpack.c.bf16 %v225_v35, %v224_v34 }
 0x255   :  { %1400 = vmatmul.msk.bf16.vlgmr.msrb.gmra.mxu0 %vm159_vm2, %v226_v36 }
 0x256   :  { %565 = vmatpush.bf16.msrb.mxu0 %v1891_v18  ;;  %v327_v39 = vpop.f32.mrf.mxu3 }
 0x257   :  { %v328_v58 = vadd.f32 %v327_v39, %v1935_v57 }
 0x259   :  { %v368_v63 = vrot.slane %v328_v58, 1 }
 0x25e   :  { %v329_v40 = vpop.f32.mrf.mxu3 }
 0x2d2   :  { %v251_v42 = vpop.f32.mrf.mxu0 }
 0x2d3   :  { %v1923_v43 = vadd.f32 %v1457_v41, %v251_v42 }
 0x2d5   :  { %v1926_v44 = vadd.f32 %v1456_v26, %v1923_v43 }
 0x2d7   :  { %v335_v45 = vadd.f32 %v286_v37, %v1926_v44  ;;  %v355_v14 = vadd.f32 %v350_v12, %v1926_v44 }
 0x2d9   :  { %v337_v46 = vsub.f32 0.0, %v335_v45  ;;  %v357_v15 = vsub.f32 0.0, %v355_v14 }
 0x2da   :  { %v253_v47 = vpop.f32.mrf.mxu0 }
 0x2db   :  { %v1929_v48 = vadd.f32 %v1457_v41, %v253_v47  ;;  %v339_v49 = vmul.f32 1.442695, %v337_v46  ;;  %v359_v17 = vmul.f32 1.442695, %v357_v15 }
 0x2dd   :  { %v1932_v51 = vadd.f32 %v1456_v26, %v1929_v48  ;;  %1459 = vpow2.f32 %v339_v49 }
 0x2df   :  { %v336_v52 = vadd.f32 %v332_v50, %v1932_v51 }
 0x2e1   :  { %v338_v53 = vsub.f32 0.0, %v336_v52 }
 0x2e3   :  { %v341_v54 = vmul.f32 1.442695, %v338_v53  ;;  %v1460_v55 = vpop.eup %1459 }
 0x2e4   :  { %v343_v56 = vadd.f32 1.0, %v1460_v55 }
 0x2e5   :  { %1461 = vpow2.f32 %v341_v54 }
 0x2e6   :  { %1463 = vrcp.f32 %v343_v56 }
 0x2eb   :  { %v1462_v59 = vpop.eup %1461 }
 0x2ec   :  { %v344_v60 = vadd.f32 1.0, %v1462_v59  ;;  %v1464_v61 = vpop.eup %1463 }
 0x2ed   :  { %v371_v62 = vmul.f32 %v1464_v61, %v328_v58 }
 0x2ee   :  { %1465 = vrcp.f32 %v344_v60 }
 0x2ef   :  { %375 = vrot.lane.b32.xlu1 %v371_v62, %s1781_s7 }
 0x2f4   :  { %v1466_v0 = vpop.eup %1465 }
 0x2f5   :  { %v372_v2 = vmul.f32 %v1466_v0, %v368_v63 }
 0x2f7   :  { %377 = vrot.lane.b32.xlu0 %v372_v2, %s1781_s7  ;;  %351 = vrot.lane.b32.xlu1 %v348_v1, %s1779_s29 }
 0x361   :  { %v376_v3 = vpop.permute.xlu1 %375 }
 0x362   :  { %v381_v4 = vadd.f32 %v376_v3, %v1923_v43 }
 0x364   :  { %1467 = vtanh.f32 %v381_v4 }
 0x369   :  { %v378_v5 = vpop.permute.xlu0 %377  ;;  %v352_v9 = vpop.permute.xlu1 %351 }
 0x36a   :  { %v382_v6 = vadd.f32 %v378_v5, %v1929_v48  ;;  %v1468_v7 = vpop.eup %1467  ;;  %v356_v10 = vadd.f32 %v352_v9, %v1932_v51 }
 0x36b   :  { %389 = vrot.lane.b32.xlu0 %v1468_v7, %s1782_s15 }
 0x36c   :  { %1469 = vtanh.f32 %v382_v6  ;;  %v358_v11 = vsub.f32 0.0, %v356_v10 }
 0x36e   :  { %v361_v13 = vmul.f32 1.442695, %v358_v11 }
 0x370   :  { %1471 = vpow2.f32 %v361_v13 }
 0x371   :  { %1473 = vpow2.f32 %v359_v17 }
 0x372   :  { %v1470_v8 = vpop.eup %1469 }
 0x373   :  { %391 = vrot.lane.b32.xlu2 %v1470_v8, %s1782_s15 }
 0x376   :  { %v1472_v16 = vpop.eup %1471 }
 0x377   :  { %v364_v19 = vadd.f32 1.0, %v1472_v16  ;;  %v1474_v20 = vpop.eup %1473 }
 0x378   :  { %v363_v22 = vadd.f32 1.0, %v1474_v20 }
 0x379   :  { %1475 = vrcp.f32 %v364_v19 }
 0x37a   :  { %1477 = vrcp.f32 %v363_v22 }
 0x37f   :  { %v1476_v21 = vpop.eup %1475 }
 0x380   :  { %v386_v26 = vsub.f32 1.0, %v1476_v21  ;;  %v398_v28 = vmul.f32 0.0, %v1476_v21  ;;  %v1478_v30 = vpop.eup %1477 }
 0x381   :  { %v385_v32 = vsub.f32 1.0, %v1478_v30  ;;  %v397_v34 = vmul.f32 0.0, %v1478_v30 }
 0x3cd   :  { %v392_v23 = vpop.permute.xlu2 %391 }
 0x3ce   :  { %v396_v27 = vmul.f32 %v392_v23, %v386_v26 }
 0x3d0   :  { %v1947_v29 = vadd.f32 %v398_v28, %v396_v27 }
 0x3d2   :  { %v402_v31 = vpack.c.bf16 %v1947_v29, %v1947_v29 }
 0x3d4   :  { %v406_v36 = vunpack.c.l.b16 %v402_v31 }
 0x3d6   :  { %v407_v39 = vrot.slane %v406_v36, 7 }
 0x3dd   :  { %v390_v33 = vpop.permute.xlu0 %389 }
 0x3de   :  { %v395_v35 = vmul.f32 %v390_v33, %v385_v32 }
 0x3e0   :  { %v1951_v37 = vadd.f32 %v397_v34, %v395_v35 }
 0x3e2   :  { %v401_v38 = vpack.c.bf16 %v1951_v37, %v1951_v37  ;;  %v523_v34 = vrot.slane %v1951_v37, 7 }
 0x3e4   :  { %v405_v40 = vunpack.c.l.b16 %v401_v38 }
 0x3e6   :  { %v409_v41 = vsel %vm408_vm3, %v407_v39, %v405_v40  ;;  %v524_v40 = vrot.slane %v1947_v29, 7 }
 0x3e7   :  { %v410_v42 = vpack.c.b16 %v409_v41, %v409_v41 }
 0x3e9   :  { %411 = vrot.lane.b32.xlu1 %v410_v42, %s1782_s15 }
 0x45b   :  { %v412_v45 = vpop.permute.xlu1 %411 }
 0x45c   :  { %1413 = vmatmul.msk.bf16.vlgmr.msra.gmra.mxu0 %vm159_vm2, %v412_v45  ;;  %1414 = vmatmul.msk.bf16.vlgmr.msra.gmra.mxu1 %vm159_vm2, %v412_v45 }
 0x45d   :  { %1415 = vmatmul.msk.bf16.vlgmr.msra.gmra.mxu2 %vm159_vm2, %v412_v45  ;;  %711 = vmatpush.bf16.msra.mxu0 %v1906_v25 }
 0x45e   :  { %818 = vmatpush.bf16.msra.mxu1 %v1901_v24  ;;  %831 = vmatpush.bf16.msra.mxu2 %v1891_v18 }
 0x4d9   :  { %v425_v46 = vpop.f32.mrf.mxu0  ;;  %v438_v47 = vpop.f32.mrf.mxu1 }
 0x4da   :  { %v456_v49 = vrot.slane %v425_v46, 7  ;;  %v460_v50 = vadd.f32 %v425_v46, %v1932_v51  ;;  %v472_v52 = vrot.slane %v438_v47, 7 }
 0x4dc   :  { %v459_v53 = vadd.f32 %v456_v49, %v1926_v44  ;;  %v462_v54 = vsub.f32 0.0, %v460_v50  ;;  %473 = vrot.lane.b32.xlu1 %v472_v52, %s1779_s29 }
 0x4de   :  { %v461_v55 = vsub.f32 0.0, %v459_v53  ;;  %v465_v56 = vmul.f32 1.442695, %v462_v54 }
 0x4e0   :  { %v463_v58 = vmul.f32 1.442695, %v461_v55  ;;  %1479 = vpow2.f32 %v465_v56  ;;  %v451_v59 = vpop.f32.mrf.mxu2 }
 0x4e1   :  { %v427_v60 = vpop.f32.mrf.mxu0  ;;  %v440_v61 = vpop.f32.mrf.mxu1  ;;  %v452_v3 = vadd.f32 %v451_v59, %v1935_v57 }
 0x4e2   :  { %1481 = vpow2.f32 %v463_v58 }
 0x4e3   :  { %v492_v5 = vrot.slane %v452_v3, 7 }
 0x4e6   :  { %v1480_v62 = vpop.eup %1479 }
 0x4e7   :  { %v468_v63 = vadd.f32 1.0, %v1480_v62 }
 0x4e8   :  { %v1482_v0 = vpop.eup %1481  ;;  %v453_v1 = vpop.f32.mrf.mxu2 }
 0x4e9   :  { %v467_v2 = vadd.f32 1.0, %v1482_v0  ;;  %1483 = vrcp.f32 %v468_v63 }
 0x4eb   :  { %1485 = vrcp.f32 %v467_v2 }
 0x4ef   :  { %v1484_v4 = vpop.eup %1483 }
 0x4f0   :  { %v496_v6 = vmul.f32 %v1484_v4, %v452_v3 }
 0x4f1   :  { %v1486_v7 = vpop.eup %1485 }
 0x4f2   :  { %501 = vrot.lane.b32.xlu0 %v496_v6, %s1781_s7  ;;  %v495_v8 = vmul.f32 %v1486_v7, %v492_v5 }
 0x4f4   :  { %499 = vrot.lane.b32.xlu2 %v495_v8, %s1781_s7 }
 0x4fc   :  { %475 = vrot.lane.b32.xlu2 %v438_v47, %s1779_s29 }
 0x54e   :  { %v500_v9 = vpop.permute.xlu2 %499  ;;  %v474_v15 = vpop.permute.xlu1 %473 }
 0x54f   :  { %v505_v10 = vadd.f32 %v500_v9, %v1923_v43  ;;  %v479_v16 = vadd.f32 %v474_v15, %v1926_v44 }
 0x551   :  { %1487 = vtanh.f32 %v505_v10  ;;  %v481_v17 = vsub.f32 0.0, %v479_v16 }
 0x553   :  { %v483_v20 = vmul.f32 1.442695, %v481_v17 }
 0x556   :  { %v476_v19 = vpop.permute.xlu2 %475 }
 0x557   :  { %v1488_v11 = vpop.eup %1487  ;;  %v480_v21 = vadd.f32 %v476_v19, %v1932_v51 }
 0x558   :  { %513 = vrot.lane.b32.xlu0 %v1488_v11, %s1782_s15 }
 0x559   :  { %v482_v22 = vsub.f32 0.0, %v480_v21 }
 0x55b   :  { %v485_v26 = vmul.f32 1.442695, %v482_v22 }
 0x564   :  { %v502_v12 = vpop.permute.xlu0 %501 }
 0x565   :  { %v506_v13 = vadd.f32 %v502_v12, %v1929_v48 }
 0x567   :  { %1489 = vtanh.f32 %v506_v13 }
 0x568   :  { %1491 = vpow2.f32 %v483_v20 }
 0x569   :  { %1493 = vpow2.f32 %v485_v26 }
 0x56d   :  { %v1490_v14 = vpop.eup %1489 }
 0x56e   :  { %515 = vrot.lane.b32.xlu1 %v1490_v14, %s1782_s15  ;;  %v1492_v23 = vpop.eup %1491 }
 0x56f   :  { %v487_v27 = vadd.f32 1.0, %v1492_v23  ;;  %v1494_v28 = vpop.eup %1493 }
 0x570   :  { %v488_v31 = vadd.f32 1.0, %v1494_v28 }
 0x571   :  { %1495 = vrcp.f32 %v487_v27 }
 0x572   :  { %1497 = vrcp.f32 %v488_v31 }
 0x577   :  { %v1496_v30 = vpop.eup %1495 }
 0x578   :  { %v509_v33 = vsub.f32 1.0, %v1496_v30  ;;  %v527_v36 = vmul.f32 %v1496_v30, %v523_v34  ;;  %v1498_v39 = vpop.eup %1497 }
 0x579   :  { %v510_v42 = vsub.f32 1.0, %v1498_v39  ;;  %v528_v47 = vmul.f32 %v1498_v39, %v524_v40 }
 0x5ca   :  { %v514_v32 = vpop.permute.xlu0 %513 }
 0x5cb   :  { %v519_v35 = vmul.f32 %v514_v32, %v509_v33 }
 0x5cd   :  { %v1977_v38 = vadd.f32 %v527_v36, %v519_v35 }
 0x5cf   :  { %v531_v41 = vpack.c.bf16 %v1977_v38, %v1977_v38 }
 0x5d1   :  { %v535_v49 = vunpack.c.l.b16 %v531_v41 }
 0x5d3   :  { %v537_v52 = vrot.slane %v535_v49, 1 }
 0x5e0   :  { %v516_v45 = vpop.permute.xlu1 %515 }
 0x5e1   :  { %v520_v46 = vmul.f32 %v516_v45, %v510_v42 }
 0x5e3   :  { %v1982_v50 = vadd.f32 %v528_v47, %v520_v46 }
 0x5e5   :  { %v532_v37 = vpack.c.bf16 %v1982_v50, %v1982_v50 }
 0x5e7   :  { %v536_v53 = vunpack.c.l.b16 %v532_v37  ;;  %v656_v37 = vrot.slane %v1982_v50, 7 }
 0x5e9   :  { %v538_v54 = vsel %vm408_vm3, %v536_v53, %v537_v52 }
 0x5ea   :  { %v539_v55 = vpack.c.b16 %v538_v54, %v538_v54 }
 0x5ec   :  { %540 = vrot.lane.b32.xlu2 %v539_v55, %s1782_s15 }
 0x646   :  { %v541_v29 = vpop.permute.xlu2 %540 }
 0x647   :  { %1416 = vmatmul.msk.bf16.vlgmr.msra.gmra.mxu3 %vm159_vm2, %v541_v29  ;;  %1417 = vmatmul.msk.bf16.vlgmr.msrb.gmra.mxu0 %vm159_vm2, %v541_v29 }
 0x648   :  { %1418 = vmatmul.msk.bf16.vlgmr.msrb.gmra.mxu1 %vm159_vm2, %v541_v29  ;;  %844 = vmatpush.bf16.msra.mxu3 %v1906_v25  ;;  %v655_v29 = vrot.slane %v1977_v38, 7 }
 0x649   :  { %951 = vmatpush.bf16.msrb.mxu0 %v1901_v24  ;;  %964 = vmatpush.bf16.msrb.mxu1 %v1891_v18 }
 0x6c4   :  { %v567_v56 = vpop.f32.mrf.mxu0 }
 0x6c5   :  { %v602_v58 = vrot.slane %v567_v56, 6  ;;  %v580_v59 = vpop.f32.mrf.mxu1  ;;  %v603_v20 = vrot.slane %v567_v56, 7 }
 0x6c6   :  { %v581_v12 = vadd.f32 %v580_v59, %v1935_v57 }
 0x6c7   :  { %604 = vrot.lane.b32.xlu2 %v602_v58, %s1779_s29 }
 0x6c8   :  { %v623_v13 = vrot.slane %v581_v12, 6  ;;  %v624_v15 = vrot.slane %v581_v12, 7 }
 0x6ca   :  { %v554_v60 = vpop.f32.mrf.mxu3 }
 0x6cb   :  { %v585_v61 = vrot.slane %v554_v60, 6  ;;  %v586_v62 = vrot.slane %v554_v60, 7 }
 0x6cc   :  { %v569_v63 = vpop.f32.mrf.mxu0 }
 0x6cd   :  { %v589_v0 = vadd.f32 %v585_v61, %v1926_v44  ;;  %v590_v1 = vadd.f32 %v586_v62, %v1932_v51  ;;  %v582_v2 = vpop.f32.mrf.mxu1 }
 0x6cf   :  { %v591_v3 = vsub.f32 0.0, %v589_v0  ;;  %v592_v4 = vsub.f32 0.0, %v590_v1 }
 0x6d1   :  { %v593_v5 = vmul.f32 1.442695, %v591_v3  ;;  %v595_v6 = vmul.f32 1.442695, %v592_v4 }
 0x6d2   :  { %v556_v7 = vpop.f32.mrf.mxu3 }
 0x6d3   :  { %1499 = vpow2.f32 %v593_v5 }
 0x6d4   :  { %1501 = vpow2.f32 %v595_v6 }
 0x6d9   :  { %v1500_v8 = vpop.eup %1499 }
 0x6da   :  { %v1502_v9 = vpop.eup %1501  ;;  %v597_v10 = vadd.f32 1.0, %v1500_v8 }
 0x6db   :  { %v598_v11 = vadd.f32 1.0, %v1502_v9 }
 0x6dc   :  { %1503 = vrcp.f32 %v597_v10 }
 0x6dd   :  { %1505 = vrcp.f32 %v598_v11 }
 0x6e2   :  { %v1504_v14 = vpop.eup %1503 }
 0x6e3   :  { %v1506_v16 = vpop.eup %1505  ;;  %v627_v17 = vmul.f32 %v1504_v14, %v623_v13 }
 0x6e4   :  { %v628_v19 = vmul.f32 %v1506_v16, %v624_v15 }
 0x6e5   :  { %631 = vrot.lane.b32.xlu0 %v627_v17, %s1781_s7 }
 0x6e6   :  { %633 = vrot.lane.b32.xlu1 %v628_v19, %s1781_s7 }
 0x6ed   :  { %606 = vrot.lane.b32.xlu0 %v603_v20, %s1779_s29 }
 0x721   :  { %v605_v33 = vpop.permute.xlu2 %604 }
 0x722   :  { %v610_v34 = vadd.f32 %v605_v33, %v1926_v44 }
 0x724   :  { %v612_v36 = vsub.f32 0.0, %v610_v34 }
 0x726   :  { %v614_v39 = vmul.f32 1.442695, %v612_v36 }
 0x757   :  { %v632_v21 = vpop.permute.xlu0 %631 }
 0x758   :  { %v634_v22 = vpop.permute.xlu1 %633  ;;  %v637_v23 = vadd.f32 %v632_v21, %v1923_v43 }
 0x759   :  { %v638_v26 = vadd.f32 %v634_v22, %v1929_v48 }
 0x75a   :  { %1507 = vtanh.f32 %v637_v23 }
 0x75b   :  { %1509 = vtanh.f32 %v638_v26 }
 0x75f   :  { %v607_v30 = vpop.permute.xlu0 %606 }
 0x760   :  { %v1508_v27 = vpop.eup %1507  ;;  %v611_v31 = vadd.f32 %v607_v30, %v1932_v51 }
 0x761   :  { %v1510_v28 = vpop.eup %1509  ;;  %645 = vrot.lane.b32.xlu1 %v1508_v27, %s1782_s15 }
 0x762   :  { %647 = vrot.lane.b32.xlu2 %v1510_v28, %s1782_s15  ;;  %v613_v32 = vsub.f32 0.0, %v611_v31 }
 0x764   :  { %v616_v35 = vmul.f32 1.442695, %v613_v32 }
 0x766   :  { %1511 = vpow2.f32 %v616_v35 }
 0x767   :  { %1513 = vpow2.f32 %v614_v39 }
 0x76c   :  { %v1512_v40 = vpop.eup %1511 }
 0x76d   :  { %v619_v41 = vadd.f32 1.0, %v1512_v40  ;;  %v1514_v42 = vpop.eup %1513 }
 0x76e   :  { %v618_v45 = vadd.f32 1.0, %v1514_v42 }
 0x76f   :  { %1515 = vrcp.f32 %v619_v41 }
 0x770   :  { %1517 = vrcp.f32 %v618_v45 }
 0x775   :  { %v1516_v46 = vpop.eup %1515 }
 0x776   :  { %v642_v49 = vsub.f32 1.0, %v1516_v46  ;;  %v660_v53 = vmul.f32 %v1516_v46, %v656_v37  ;;  %v1518_v54 = vpop.eup %1517 }
 0x777   :  { %v641_v56 = vsub.f32 1.0, %v1518_v54  ;;  %v659_v61 = vmul.f32 %v1518_v54, %v655_v29 }
 0x7bc   :  { %v648_v47 = vpop.permute.xlu2 %647 }
 0x7bd   :  { %v652_v52 = vmul.f32 %v648_v47, %v642_v49 }
 0x7bf   :  { %v2008_v55 = vadd.f32 %v660_v53, %v652_v52 }
 0x7c1   :  { %v664_v59 = vpack.c.bf16 %v2008_v55, %v2008_v55 }
 0x7c3   :  { %v668_v63 = vunpack.c.l.b16 %v664_v59 }
 0x7c5   :  { %v670_v1 = vrot.slane %v668_v63, 1 }
 0x7d3   :  { %v646_v58 = vpop.permute.xlu1 %645 }
 0x7d4   :  { %v651_v60 = vmul.f32 %v646_v58, %v641_v56 }
 0x7d6   :  { %v2013_v62 = vadd.f32 %v659_v61, %v651_v60 }
 0x7d8   :  { %v663_v50 = vpack.c.bf16 %v2013_v62, %v2013_v62 }
 0x7da   :  { %v667_v0 = vunpack.c.l.b16 %v663_v50  ;;  %v788_v50 = vrot.slane %v2013_v62, 7 }
 0x7dc   :  { %v669_v2 = vrot.slane %v667_v0, 2 }
 0x7de   :  { %v671_v3 = vsel %vm408_vm3, %v670_v1, %v669_v2  ;;  %v789_v1 = vrot.slane %v2008_v55, 7 }
 0x7df   :  { %v672_v4 = vpack.c.b16 %v671_v3, %v671_v3 }
 0x7e1   :  { %673 = vrot.lane.b32.xlu0 %v672_v4, %s1782_s15 }
 0x853   :  { %v674_v38 = vpop.permute.xlu0 %673 }
 0x854   :  { %1419 = vmatmul.msk.bf16.vlgmr.msrb.gmra.mxu2 %vm159_vm2, %v674_v38  ;;  %1420 = vmatmul.msk.bf16.vlgmr.msrb.gmra.mxu3 %vm159_vm2, %v674_v38 }
 0x855   :  { %1421 = vmatmul.msk.bf16.vlgmr.msra.gmra.mxu0 %vm159_vm2, %v674_v38  ;;  %977 = vmatpush.bf16.msrb.mxu2 %v1906_v25 }
 0x856   :  { %1084 = vmatpush.bf16.msrb.mxu3 %v1901_v24  ;;  %1097 = vmatpush.bf16.msra.mxu0 %v1891_v18 }
 0x8d2   :  { %v713_v5 = vpop.f32.mrf.mxu0 }
 0x8d3   :  { %v714_v27 = vadd.f32 %v713_v5, %v1935_v57 }
 0x8d5   :  { %v756_v28 = vrot.slane %v714_v27, 5  ;;  %v757_v31 = vrot.slane %v714_v27, 6 }
 0x8d7   :  { %v687_v6 = vpop.f32.mrf.mxu2  ;;  %v700_v7 = vpop.f32.mrf.mxu3 }
 0x8d8   :  { %v718_v8 = vrot.slane %v687_v6, 5  ;;  %v719_v9 = vrot.slane %v687_v6, 6  ;;  %v735_v10 = vrot.slane %v700_v7, 5  ;;  %v736_v35 = vrot.slane %v700_v7, 6 }
 0x8da   :  { %v722_v11 = vadd.f32 %v718_v8, %v1926_v44  ;;  %v723_v12 = vadd.f32 %v719_v9, %v1932_v51  ;;  %v715_v13 = vpop.f32.mrf.mxu0  ;;  %737 = vrot.lane.b32.xlu0 %v735_v10, %s1779_s29 }
 0x8dc   :  { %v724_v14 = vsub.f32 0.0, %v722_v11  ;;  %v725_v15 = vsub.f32 0.0, %v723_v12 }
 0x8de   :  { %v726_v16 = vmul.f32 1.442695, %v724_v14  ;;  %v728_v17 = vmul.f32 1.442695, %v725_v15 }
 0x8df   :  { %v689_v19 = vpop.f32.mrf.mxu2  ;;  %v702_v20 = vpop.f32.mrf.mxu3 }
 0x8e0   :  { %1519 = vpow2.f32 %v726_v16 }
 0x8e1   :  { %1521 = vpow2.f32 %v728_v17 }
 0x8e6   :  { %v1520_v21 = vpop.eup %1519 }
 0x8e7   :  { %v1522_v22 = vpop.eup %1521  ;;  %v730_v23 = vadd.f32 1.0, %v1520_v21 }
 0x8e8   :  { %v731_v26 = vadd.f32 1.0, %v1522_v22 }
 0x8e9   :  { %1523 = vrcp.f32 %v730_v23 }
 0x8ea   :  { %1525 = vrcp.f32 %v731_v26 }
 0x8ef   :  { %v1524_v30 = vpop.eup %1523 }
 0x8f0   :  { %v1526_v32 = vpop.eup %1525  ;;  %v760_v33 = vmul.f32 %v1524_v30, %v756_v28 }
 0x8f1   :  { %v761_v34 = vmul.f32 %v1526_v32, %v757_v31 }
 0x8f2   :  { %764 = vrot.lane.b32.xlu1 %v760_v33, %s1781_s7 }
 0x8f3   :  { %766 = vrot.lane.b32.xlu2 %v761_v34, %s1781_s7 }
 0x8fa   :  { %739 = vrot.lane.b32.xlu1 %v736_v35, %s1779_s29 }
 0x94c   :  { %v738_v46 = vpop.permute.xlu0 %737 }
 0x94d   :  { %v767_v36 = vpop.permute.xlu2 %766  ;;  %v743_v49 = vadd.f32 %v738_v46, %v1926_v44 }
 0x94e   :  { %v771_v39 = vadd.f32 %v767_v36, %v1929_v48 }
 0x94f   :  { %v745_v52 = vsub.f32 0.0, %v743_v49 }
 0x950   :  { %1527 = vtanh.f32 %v771_v39 }
 0x951   :  { %v747_v54 = vmul.f32 1.442695, %v745_v52 }
 0x956   :  { %v1528_v40 = vpop.eup %1527 }
 0x957   :  { %780 = vrot.lane.b32.xlu0 %v1528_v40, %s1782_s15 }
 0x964   :  { %v765_v41 = vpop.permute.xlu1 %764 }
 0x965   :  { %v770_v42 = vadd.f32 %v765_v41, %v1923_v43 }
 0x967   :  { %1529 = vtanh.f32 %v770_v42 }
 0x968   :  { %1531 = vpow2.f32 %v747_v54 }
 0x96c   :  { %v740_v47 = vpop.permute.xlu1 %739 }
 0x96d   :  { %v1530_v45 = vpop.eup %1529  ;;  %v744_v37 = vadd.f32 %v740_v47, %v1932_v51 }
 0x96e   :  { %778 = vrot.lane.b32.xlu2 %v1530_v45, %s1782_s15  ;;  %v1532_v56 = vpop.eup %1531 }
 0x96f   :  { %v746_v53 = vsub.f32 0.0, %v744_v37  ;;  %v751_v59 = vadd.f32 1.0, %v1532_v56 }
 0x971   :  { %v749_v29 = vmul.f32 1.442695, %v746_v53 }
 0x973   :  { %1533 = vpow2.f32 %v749_v29 }
 0x974   :  { %1535 = vrcp.f32 %v751_v59 }
 0x979   :  { %v1534_v58 = vpop.eup %1533 }
 0x97a   :  { %v752_v60 = vadd.f32 1.0, %v1534_v58  ;;  %v1536_v61 = vpop.eup %1535 }
 0x97b   :  { %v774_v0 = vsub.f32 1.0, %v1536_v61  ;;  %v792_v38 = vmul.f32 %v1536_v61, %v788_v50 }
 0x97c   :  { %1537 = vrcp.f32 %v752_v60 }
 0x982   :  { %v1538_v63 = vpop.eup %1537 }
 0x983   :  { %v775_v2 = vsub.f32 1.0, %v1538_v63  ;;  %v793_v7 = vmul.f32 %v1538_v63, %v789_v1 }
 0x9c8   :  { %v779_v3 = vpop.permute.xlu2 %778 }
 0x9c9   :  { %v781_v4 = vpop.permute.xlu0 %780  ;;  %v784_v5 = vmul.f32 %v779_v3, %v774_v0 }
 0x9ca   :  { %v785_v6 = vmul.f32 %v781_v4, %v775_v2 }
 0x9cb   :  { %v2040_v8 = vadd.f32 %v792_v38, %v784_v5 }
 0x9cc   :  { %v2042_v9 = vadd.f32 %v793_v7, %v785_v6 }
 0x9cd   :  { %v796_v10 = vpack.c.bf16 %v2040_v8, %v2040_v8 }
 0x9ce   :  { %v797_v62 = vpack.c.bf16 %v2042_v9, %v2042_v9 }
 0x9cf   :  { %v800_v11 = vunpack.c.l.b16 %v796_v10 }
 0x9d0   :  { %v801_v12 = vunpack.c.l.b16 %v797_v62  ;;  %v921_v62 = vrot.slane %v2040_v8, 7 }
 0x9d1   :  { %v802_v55 = vrot.slane %v800_v11, 3 }
 0x9d2   :  { %v803_v13 = vrot.slane %v801_v12, 2 }
 0x9d4   :  { %v804_v14 = vsel %vm408_vm3, %v803_v13, %v802_v55 }
 0x9d5   :  { %v805_v15 = vpack.c.b16 %v804_v14, %v804_v14  ;;  %v922_v14 = vrot.slane %v2042_v9, 7 }
 0x9d7   :  { %806 = vrot.lane.b32.xlu1 %v805_v15, %s1782_s15 }
 0xa49   :  { %v807_v16 = vpop.permute.xlu1 %806 }
 0xa4a   :  { %1422 = vmatmul.msk.bf16.vlgmr.msra.gmra.mxu1 %vm159_vm2, %v807_v16  ;;  %1423 = vmatmul.msk.bf16.vlgmr.msra.gmra.mxu2 %vm159_vm2, %v807_v16 }
 0xa4b   :  { %1424 = vmatmul.msk.bf16.vlgmr.msra.gmra.mxu3 %vm159_vm2, %v807_v16  ;;  %1110 = vmatpush.bf16.msra.mxu1 %v1906_v25 }
 0xa4c   :  { %1217 = vmatpush.bf16.msra.mxu2 %v1901_v24  ;;  %1230 = vmatpush.bf16.msra.mxu3 %v1891_v18 }
 0xac7   :  { %v820_v17 = vpop.f32.mrf.mxu1 }
 0xac8   :  { %v851_v19 = vrot.slane %v820_v17, 4  ;;  %v852_v20 = vrot.slane %v820_v17, 5 }
 0xaca   :  { %v855_v21 = vadd.f32 %v851_v19, %v1926_v44  ;;  %v856_v22 = vadd.f32 %v852_v20, %v1932_v51 }
 0xacc   :  { %v857_v23 = vsub.f32 0.0, %v855_v21  ;;  %v858_v26 = vsub.f32 0.0, %v856_v22 }
 0xacd   :  { %v833_v27 = vpop.f32.mrf.mxu2 }
 0xace   :  { %v859_v28 = vmul.f32 1.442695, %v857_v23  ;;  %v861_v30 = vmul.f32 1.442695, %v858_v26  ;;  %v868_v31 = vrot.slane %v833_v27, 4  ;;  %v846_v32 = vpop.f32.mrf.mxu3  ;;  %v869_v37 = vrot.slane %v833_v27, 5 }
 0xacf   :  { %v822_v33 = vpop.f32.mrf.mxu1  ;;  %v847_v40 = vadd.f32 %v846_v32, %v1935_v57 }
 0xad0   :  { %1539 = vpow2.f32 %v859_v28  ;;  %870 = vrot.lane.b32.xlu1 %v868_v31, %s1779_s29 }
 0xad1   :  { %1541 = vpow2.f32 %v861_v30  ;;  %v889_v41 = vrot.slane %v847_v40, 4  ;;  %v890_v45 = vrot.slane %v847_v40, 5 }
 0xad5   :  { %v835_v18 = vpop.f32.mrf.mxu2 }
 0xad6   :  { %v1540_v24 = vpop.eup %1539  ;;  %v848_v34 = vpop.f32.mrf.mxu3 }
 0xad7   :  { %v1542_v35 = vpop.eup %1541  ;;  %v863_v36 = vadd.f32 1.0, %v1540_v24 }
 0xad8   :  { %v864_v39 = vadd.f32 1.0, %v1542_v35 }
 0xad9   :  { %1543 = vrcp.f32 %v863_v36 }
 0xada   :  { %1545 = vrcp.f32 %v864_v39 }
 0xadf   :  { %v1544_v42 = vpop.eup %1543 }
 0xae0   :  { %v1546_v46 = vpop.eup %1545  ;;  %v893_v47 = vmul.f32 %v1544_v42, %v889_v41 }
 0xae1   :  { %v894_v49 = vmul.f32 %v1546_v46, %v890_v45 }
 0xae2   :  { %897 = vrot.lane.b32.xlu2 %v893_v47, %s1781_s7 }
 0xae3   :  { %899 = vrot.lane.b32.xlu0 %v894_v49, %s1781_s7 }
 0xaea   :  { %872 = vrot.lane.b32.xlu2 %v869_v37, %s1779_s29 }
 0xb3c   :  { %v898_v52 = vpop.permute.xlu2 %897 }
 0xb3d   :  { %v903_v53 = vadd.f32 %v898_v52, %v1923_v43 }
 0xb3f   :  { %1547 = vtanh.f32 %v903_v53 }
 0xb42   :  { %v871_v59 = vpop.permute.xlu1 %870 }
 0xb43   :  { %v876_v60 = vadd.f32 %v871_v59, %v1926_v44 }
 0xb44   :  { %v873_v63 = vpop.permute.xlu2 %872 }
 0xb45   :  { %v1548_v54 = vpop.eup %1547  ;;  %v878_v61 = vsub.f32 0.0, %v876_v60  ;;  %v877_v0 = vadd.f32 %v873_v63, %v1932_v51 }
 0xb46   :  { %911 = vrot.lane.b32.xlu0 %v1548_v54, %s1782_s15 }
 0xb47   :  { %v880_v50 = vmul.f32 1.442695, %v878_v61  ;;  %v879_v1 = vsub.f32 0.0, %v877_v0 }
 0xb49   :  { %v882_v2 = vmul.f32 1.442695, %v879_v1 }
 0xb55   :  { %v900_v29 = vpop.permute.xlu0 %899 }
 0xb56   :  { %v904_v56 = vadd.f32 %v900_v29, %v1929_v48 }
 0xb58   :  { %1549 = vtanh.f32 %v904_v56 }
 0xb59   :  { %1551 = vpow2.f32 %v880_v50 }
 0xb5a   :  { %1553 = vpow2.f32 %v882_v2 }
 0xb5e   :  { %v1550_v58 = vpop.eup %1549 }
 0xb5f   :  { %913 = vrot.lane.b32.xlu1 %v1550_v58, %s1782_s15  ;;  %v1552_v3 = vpop.eup %1551 }
 0xb60   :  { %v884_v4 = vadd.f32 1.0, %v1552_v3  ;;  %v1554_v38 = vpop.eup %1553 }
 0xb61   :  { %v885_v5 = vadd.f32 1.0, %v1554_v38 }
 0xb62   :  { %1555 = vrcp.f32 %v884_v4 }
 0xb63   :  { %1557 = vrcp.f32 %v885_v5 }
 0xb68   :  { %v1556_v6 = vpop.eup %1555 }
 0xb69   :  { %v907_v10 = vsub.f32 1.0, %v1556_v6  ;;  %v925_v12 = vmul.f32 %v1556_v6, %v921_v62  ;;  %v1558_v55 = vpop.eup %1557 }
 0xb6a   :  { %v908_v15 = vsub.f32 1.0, %v1558_v55  ;;  %v926_v20 = vmul.f32 %v1558_v55, %v922_v14 }
 0xbb8   :  { %v912_v7 = vpop.permute.xlu0 %911 }
 0xbb9   :  { %v917_v11 = vmul.f32 %v912_v7, %v907_v10 }
 0xbbb   :  { %v2070_v13 = vadd.f32 %v925_v12, %v917_v11 }
 0xbbd   :  { %v929_v17 = vpack.c.bf16 %v2070_v13, %v2070_v13 }
 0xbbf   :  { %v933_v22 = vunpack.c.l.b16 %v929_v17 }
 0xbc1   :  { %v935_v26 = vrot.slane %v933_v22, 4 }
 0xbd1   :  { %v914_v16 = vpop.permute.xlu1 %913 }
 0xbd2   :  { %v918_v19 = vmul.f32 %v914_v16, %v908_v15 }
 0xbd4   :  { %v2075_v21 = vadd.f32 %v926_v20, %v918_v19 }
 0xbd6   :  { %v930_v8 = vpack.c.bf16 %v2075_v21, %v2075_v21  ;;  %v1055_v20 = vrot.slane %v2075_v21, 7 }
 0xbd8   :  { %v934_v23 = vunpack.c.l.b16 %v930_v8 }
 0xbda   :  { %v936_v27 = vrot.slane %v934_v23, 3 }
 0xbdc   :  { %v937_v28 = vsel %vm408_vm3, %v936_v27, %v935_v26  ;;  %v1054_v27 = vrot.slane %v2070_v13, 7 }
 0xbdd   :  { %v938_v30 = vpack.c.b16 %v937_v28, %v937_v28 }
 0xbdf   :  { %939 = vrot.lane.b32.xlu2 %v938_v30, %s1782_s15 }
 0xc39   :  { %v940_v9 = vpop.permute.xlu2 %939 }
 0xc3a   :  { %1425 = vmatmul.msk.bf16.vlgmr.msrb.gmra.mxu0 %vm159_vm2, %v940_v9  ;;  %1426 = vmatmul.msk.bf16.vlgmr.msrb.gmra.mxu1 %vm159_vm2, %v940_v9 }
 0xc3b   :  { %1427 = vmatmul.msk.bf16.vlgmr.msrb.gmra.mxu2 %vm159_vm2, %v940_v9  ;;  %1243 = vmatpush.bf16.msrb.mxu0 %v1906_v25 }
 0xcb7   :  { %v953_v31 = vpop.f32.mrf.mxu0  ;;  %v966_v32 = vpop.f32.mrf.mxu1 }
 0xcb8   :  { %v984_v33 = vrot.slane %v953_v31, 3  ;;  %v985_v18 = vrot.slane %v953_v31, 4  ;;  %v1001_v24 = vrot.slane %v966_v32, 3  ;;  %v1002_v61 = vrot.slane %v966_v32, 4 }
 0xcba   :  { %v988_v34 = vadd.f32 %v984_v33, %v1926_v44  ;;  %v989_v35 = vadd.f32 %v985_v18, %v1932_v51  ;;  %1003 = vrot.lane.b32.xlu2 %v1001_v24, %s1779_s29 }
 0xcbc   :  { %v990_v36 = vsub.f32 0.0, %v988_v34  ;;  %v991_v39 = vsub.f32 0.0, %v989_v35 }
 0xcbe   :  { %v992_v40 = vmul.f32 1.442695, %v990_v36  ;;  %v994_v41 = vmul.f32 1.442695, %v991_v39  ;;  %v979_v42 = vpop.f32.mrf.mxu2 }
 0xcbf   :  { %v955_v45 = vpop.f32.mrf.mxu0  ;;  %v968_v46 = vpop.f32.mrf.mxu1  ;;  %v980_v53 = vadd.f32 %v979_v42, %v1935_v57 }
 0xcc0   :  { %1559 = vpow2.f32 %v992_v40 }
 0xcc1   :  { %1561 = vpow2.f32 %v994_v41  ;;  %v1022_v54 = vrot.slane %v980_v53, 3  ;;  %v1023_v56 = vrot.slane %v980_v53, 4 }
 0xcc6   :  { %v1560_v25 = vpop.eup %1559  ;;  %v981_v47 = vpop.f32.mrf.mxu2 }
 0xcc7   :  { %v1562_v49 = vpop.eup %1561  ;;  %v996_v37 = vadd.f32 1.0, %v1560_v25 }
 0xcc8   :  { %v997_v52 = vadd.f32 1.0, %v1562_v49 }
 0xcc9   :  { %1563 = vrcp.f32 %v996_v37 }
 0xcca   :  { %1565 = vrcp.f32 %v997_v52 }
 0xccf   :  { %v1564_v29 = vpop.eup %1563 }
 0xcd0   :  { %v1566_v58 = vpop.eup %1565  ;;  %v1026_v59 = vmul.f32 %v1564_v29, %v1022_v54 }
 0xcd1   :  { %v1027_v60 = vmul.f32 %v1566_v58, %v1023_v56 }
 0xcd2   :  { %1030 = vrot.lane.b32.xlu0 %v1026_v59, %s1781_s7 }
 0xcd3   :  { %1032 = vrot.lane.b32.xlu1 %v1027_v60, %s1781_s7 }
 0xcda   :  { %1005 = vrot.lane.b32.xlu0 %v1002_v61, %s1779_s29 }
 0xd14   :  { %v1004_v6 = vpop.permute.xlu2 %1003 }
 0xd15   :  { %v1009_v7 = vadd.f32 %v1004_v6, %v1926_v44 }
 0xd17   :  { %v1011_v62 = vsub.f32 0.0, %v1009_v7 }
 0xd19   :  { %v1013_v11 = vmul.f32 1.442695, %v1011_v62 }
 0xd44   :  { %v1031_v63 = vpop.permute.xlu0 %1030 }
 0xd45   :  { %v1033_v50 = vpop.permute.xlu1 %1032  ;;  %v1036_v0 = vadd.f32 %v1031_v63, %v1923_v43 }
 0xd46   :  { %v1037_v1 = vadd.f32 %v1033_v50, %v1929_v48 }
 0xd47   :  { %1567 = vtanh.f32 %v1036_v0 }
 0xd48   :  { %1569 = vtanh.f32 %v1037_v1 }
 0xd4c   :  { %v1006_v4 = vpop.permute.xlu0 %1005 }
 0xd4d   :  { %v1568_v2 = vpop.eup %1567  ;;  %v1010_v38 = vadd.f32 %v1006_v4, %v1932_v51 }
 0xd4e   :  { %v1570_v3 = vpop.eup %1569  ;;  %1044 = vrot.lane.b32.xlu1 %v1568_v2, %s1782_s15 }
 0xd4f   :  { %1046 = vrot.lane.b32.xlu2 %v1570_v3, %s1782_s15  ;;  %v1012_v5 = vsub.f32 0.0, %v1010_v38 }
 0xd51   :  { %v1015_v10 = vmul.f32 1.442695, %v1012_v5 }
 0xd53   :  { %1571 = vpow2.f32 %v1015_v10 }
 0xd54   :  { %1573 = vpow2.f32 %v1013_v11 }
 0xd59   :  { %v1572_v12 = vpop.eup %1571 }
 0xd5a   :  { %v1018_v55 = vadd.f32 1.0, %v1572_v12  ;;  %v1574_v14 = vpop.eup %1573 }
 0xd5b   :  { %v1017_v15 = vadd.f32 1.0, %v1574_v14 }
 0xd5c   :  { %1575 = vrcp.f32 %v1018_v55 }
 0xd5d   :  { %1577 = vrcp.f32 %v1017_v15 }
 0xd62   :  { %v1576_v16 = vpop.eup %1575 }
 0xd63   :  { %v1041_v19 = vsub.f32 1.0, %v1576_v16  ;;  %v1059_v8 = vmul.f32 %v1576_v16, %v1055_v20  ;;  %v1578_v23 = vpop.eup %1577 }
 0xd64   :  { %v1040_v28 = vsub.f32 1.0, %v1578_v23  ;;  %v1058_v32 = vmul.f32 %v1578_v23, %v1054_v27 }
 0xda9   :  { %v1047_v17 = vpop.permute.xlu2 %1046 }
 0xdaa   :  { %v1051_v22 = vmul.f32 %v1047_v17, %v1041_v19 }
 0xdac   :  { %v2099_v26 = vadd.f32 %v1059_v8, %v1051_v22 }
 0xdae   :  { %v1063_v9 = vpack.c.bf16 %v2099_v26, %v2099_v26 }
 0xdb0   :  { %v1067_v18 = vunpack.c.l.b16 %v1063_v9 }
 0xdb2   :  { %v1069_v34 = vrot.slane %v1067_v18, 4  ;;  %v1188_v18 = vrot.slane %v2099_v26, 7 }
 0xdc0   :  { %v1045_v30 = vpop.permute.xlu1 %1044 }
 0xdc1   :  { %v1050_v31 = vmul.f32 %v1045_v30, %v1040_v28 }
 0xdc3   :  { %v2104_v33 = vadd.f32 %v1058_v32, %v1050_v31 }
 0xdc5   :  { %v1062_v21 = vpack.c.bf16 %v2104_v33, %v2104_v33  ;;  %v1187_v31 = vrot.slane %v2104_v33, 7 }
 0xdc7   :  { %v1066_v24 = vunpack.c.l.b16 %v1062_v21 }
 0xdc9   :  { %v1068_v35 = vrot.slane %v1066_v24, 5 }
 0xdcb   :  { %v1070_v36 = vsel %vm408_vm3, %v1069_v34, %v1068_v35 }
 0xdcc   :  { %v1071_v39 = vpack.c.b16 %v1070_v36, %v1070_v36 }
 0xdce   :  { %1072 = vrot.lane.b32.xlu0 %v1071_v39, %s1782_s15 }
 0xe40   :  { %v1073_v13 = vpop.permute.xlu0 %1072 }
 0xe41   :  { %1428 = vmatmul.msk.bf16.vlgmr.msrb.gmra.mxu3 %vm159_vm2, %v1073_v13  ;;  %1429 = vmatmul.msk.bf16.vlgmr.msra.gmra.mxu0 %vm159_vm2, %v1073_v13 }
 0xe42   :  { %1430 = vmatmul.msk.bf16.vlgmr.msra.gmra.mxu1 %vm159_vm2, %v1073_v13 }
 0xebe   :  { %v1099_v40 = vpop.f32.mrf.mxu0 }
 0xebf   :  { %v1134_v41 = vrot.slane %v1099_v40, 2  ;;  %v1112_v42 = vpop.f32.mrf.mxu1  ;;  %v1135_v5 = vrot.slane %v1099_v40, 3 }
 0xec0   :  { %v1113_v50 = vadd.f32 %v1112_v42, %v1935_v57 }
 0xec1   :  { %1136 = vrot.lane.b32.xlu0 %v1134_v41, %s1779_s29 }
 0xec2   :  { %v1155_v0 = vrot.slane %v1113_v50, 2  ;;  %v1156_v2 = vrot.slane %v1113_v50, 3 }
 0xec4   :  { %v1086_v45 = vpop.f32.mrf.mxu3 }
 0xec5   :  { %v1117_v46 = vrot.slane %v1086_v45, 2  ;;  %v1118_v25 = vrot.slane %v1086_v45, 3 }
 0xec6   :  { %v1101_v47 = vpop.f32.mrf.mxu0 }
 0xec7   :  { %v1121_v49 = vadd.f32 %v1117_v46, %v1926_v44  ;;  %v1122_v37 = vadd.f32 %v1118_v25, %v1932_v51  ;;  %v1114_v52 = vpop.f32.mrf.mxu1 }
 0xec9   :  { %v1123_v53 = vsub.f32 0.0, %v1121_v49  ;;  %v1124_v54 = vsub.f32 0.0, %v1122_v37 }
 0xecb   :  { %v1125_v29 = vmul.f32 1.442695, %v1123_v53  ;;  %v1127_v56 = vmul.f32 1.442695, %v1124_v54 }
 0xecc   :  { %v1088_v58 = vpop.f32.mrf.mxu3 }
 0xecd   :  { %1579 = vpow2.f32 %v1125_v29 }
 0xece   :  { %1581 = vpow2.f32 %v1127_v56 }
 0xed3   :  { %v1580_v59 = vpop.eup %1579 }
 0xed4   :  { %v1582_v60 = vpop.eup %1581  ;;  %v1129_v61 = vadd.f32 1.0, %v1580_v59 }
 0xed5   :  { %v1130_v63 = vadd.f32 1.0, %v1582_v60 }
 0xed6   :  { %1583 = vrcp.f32 %v1129_v61 }
 0xed7   :  { %1585 = vrcp.f32 %v1130_v63 }
 0xedc   :  { %v1584_v1 = vpop.eup %1583 }
 0xedd   :  { %v1586_v3 = vpop.eup %1585  ;;  %v1159_v4 = vmul.f32 %v1584_v1, %v1155_v0 }
 0xede   :  { %v1160_v38 = vmul.f32 %v1586_v3, %v1156_v2 }
 0xedf   :  { %1163 = vrot.lane.b32.xlu1 %v1159_v4, %s1781_s7 }
 0xee0   :  { %1165 = vrot.lane.b32.xlu2 %v1160_v38, %s1781_s7 }
 0xee7   :  { %1138 = vrot.lane.b32.xlu1 %v1135_v5, %s1779_s29 }
 0xf33   :  { %v1137_v55 = vpop.permute.xlu0 %1136 }
 0xf34   :  { %v1142_v15 = vadd.f32 %v1137_v55, %v1926_v44 }
 0xf36   :  { %v1144_v17 = vsub.f32 0.0, %v1142_v15 }
 0xf38   :  { %v1146_v20 = vmul.f32 1.442695, %v1144_v17 }
 0xf3a   :  { %v1166_v6 = vpop.permute.xlu2 %1165 }
 0xf3b   :  { %v1170_v7 = vadd.f32 %v1166_v6, %v1929_v48 }
 0xf3d   :  { %1587 = vtanh.f32 %v1170_v7 }
 0xf43   :  { %v1588_v10 = vpop.eup %1587 }
 0xf44   :  { %1179 = vrot.lane.b32.xlu0 %v1588_v10, %s1782_s15 }
 0xf51   :  { %v1164_v62 = vpop.permute.xlu1 %1163 }
 0xf52   :  { %v1169_v11 = vadd.f32 %v1164_v62, %v1923_v43 }
 0xf54   :  { %1589 = vtanh.f32 %v1169_v11 }
 0xf55   :  { %1591 = vpow2.f32 %v1146_v20 }
 0xf59   :  { %v1139_v14 = vpop.permute.xlu1 %1138 }
 0xf5a   :  { %v1590_v12 = vpop.eup %1589  ;;  %v1143_v16 = vadd.f32 %v1139_v14, %v1932_v51 }
 0xf5b   :  { %1177 = vrot.lane.b32.xlu2 %v1590_v12, %s1782_s15  ;;  %v1592_v8 = vpop.eup %1591 }
 0xf5c   :  { %v1145_v19 = vsub.f32 0.0, %v1143_v16  ;;  %v1150_v27 = vadd.f32 1.0, %v1592_v8 }
 0xf5e   :  { %v1148_v22 = vmul.f32 1.442695, %v1145_v19 }
 0xf60   :  { %1593 = vpow2.f32 %v1148_v22 }
 0xf61   :  { %1595 = vrcp.f32 %v1150_v27 }
 0xf66   :  { %v1594_v23 = vpop.eup %1593 }
 0xf67   :  { %v1151_v28 = vadd.f32 1.0, %v1594_v23  ;;  %v1596_v30 = vpop.eup %1595 }
 0xf68   :  { %v1173_v32 = vsub.f32 1.0, %v1596_v30  ;;  %v1191_v35 = vmul.f32 %v1596_v30, %v1187_v31 }
 0xf69   :  { %1597 = vrcp.f32 %v1151_v28 }
 0xf6f   :  { %v1598_v9 = vpop.eup %1597 }
 0xf70   :  { %v1174_v21 = vsub.f32 1.0, %v1598_v9  ;;  %v1192_v13 = vmul.f32 %v1598_v9, %v1188_v18 }
 0xfb5   :  { %v1178_v24 = vpop.permute.xlu2 %1177 }
 0xfb6   :  { %v1180_v34 = vpop.permute.xlu0 %1179  ;;  %v1183_v36 = vmul.f32 %v1178_v24, %v1173_v32  ;;  %v1329_v32 = vld [vmem:[%s2180_s12 + $0x8] sm:$0xff] }
 0xfb7   :  { %v1184_v39 = vmul.f32 %v1180_v34, %v1174_v21  ;;  %1357 = vmatpush.msrb.mxu1 %v1329_v32 }
 0xfb8   :  { %v2128_v40 = vadd.f32 %v1191_v35, %v1183_v36 }
 0xfb9   :  { %v2130_v41 = vadd.f32 %v1192_v13, %v1184_v39 }
 0xfba   :  { %v1195_v42 = vpack.c.bf16 %v2128_v40, %v2128_v40  ;;  %v1320_v39 = vrot.slane %v2128_v40, 7  ;;  %v1458_v40 = vld [vmem:[#allocation10] ss:$0 sm:$0xff] }
 0xfbb   :  { %v1196_v33 = vpack.c.bf16 %v2130_v41, %v2130_v41 }
 0xfbc   :  { %v1199_v45 = vunpack.c.l.b16 %v1195_v42  ;;  %v1321_v42 = vrot.slane %v2130_v41, 7 }
 0xfbd   :  { %v1200_v46 = vunpack.c.l.b16 %v1196_v33 }
 0xfbe   :  { %v1201_v26 = vrot.slane %v1199_v45, 6 }
 0xfbf   :  { %v1202_v25 = vrot.slane %v1200_v46, 5 }
 0xfc1   :  { %v1203_v47 = vsel %vm408_vm3, %v1202_v25, %v1201_v26 }
 0xfc2   :  { %v1204_v49 = vpack.c.b16 %v1203_v47, %v1203_v47 }
 0xfc4   :  { %1205 = vrot.lane.b32.xlu1 %v1204_v49, %s1782_s15 }
0x1036   :  { %v1206_v37 = vpop.permute.xlu1 %1205 }
0x1037   :  { %1431 = vmatmul.msk.bf16.vlgmr.msra.gmra.mxu2 %vm159_vm2, %v1206_v37  ;;  %1432 = vmatmul.msk.bf16.vlgmr.msra.gmra.mxu3 %vm159_vm2, %v1206_v37 }
0x1038   :  { %1433 = vmatmul.msk.bf16.vlgmr.msrb.gmra.mxu0 %vm159_vm2, %v1206_v37 }
0x10b5   :  { %v1245_v52 = vpop.f32.mrf.mxu0 }
0x10b6   :  { %v1246_v7 = vadd.f32 %v1245_v52, %v1935_v57 }
0x10b8   :  { %v1288_v10 = vrot.slane %v1246_v7, 1  ;;  %v1289_v11 = vrot.slane %v1246_v7, 2 }
0x10ba   :  { %v1219_v53 = vpop.f32.mrf.mxu2  ;;  %v1232_v54 = vpop.f32.mrf.mxu3 }
0x10bb   :  { %v1250_v29 = vrot.slane %v1219_v53, 1  ;;  %v1251_v56 = vrot.slane %v1219_v53, 2  ;;  %v1267_v58 = vrot.slane %v1232_v54, 1  ;;  %v1268_v15 = vrot.slane %v1232_v54, 2 }
0x10bd   :  { %v1254_v59 = vadd.f32 %v1250_v29, %v1926_v44  ;;  %v1255_v60 = vadd.f32 %v1251_v56, %v1932_v51  ;;  %v1247_v61 = vpop.f32.mrf.mxu0  ;;  %1269 = vrot.lane.b32.xlu1 %v1267_v58, %s1779_s29 }
0x10bf   :  { %v1256_v63 = vsub.f32 0.0, %v1254_v59  ;;  %v1257_v50 = vsub.f32 0.0, %v1255_v60 }
0x10c1   :  { %v1258_v0 = vmul.f32 1.442695, %v1256_v63  ;;  %v1260_v1 = vmul.f32 1.442695, %v1257_v50 }
0x10c2   :  { %v1221_v2 = vpop.f32.mrf.mxu2  ;;  %v1234_v3 = vpop.f32.mrf.mxu3 }
0x10c3   :  { %1599 = vpow2.f32 %v1258_v0 }
0x10c4   :  { %1601 = vpow2.f32 %v1260_v1 }
0x10c9   :  { %v1600_v4 = vpop.eup %1599 }
0x10ca   :  { %v1602_v38 = vpop.eup %1601  ;;  %v1262_v5 = vadd.f32 1.0, %v1600_v4 }
0x10cb   :  { %v1263_v6 = vadd.f32 1.0, %v1602_v38 }
0x10cc   :  { %1603 = vrcp.f32 %v1262_v5 }
0x10cd   :  { %1605 = vrcp.f32 %v1263_v6 }
0x10d2   :  { %v1604_v62 = vpop.eup %1603 }
0x10d3   :  { %v1606_v12 = vpop.eup %1605  ;;  %v1292_v55 = vmul.f32 %v1604_v62, %v1288_v10 }
0x10d4   :  { %v1293_v14 = vmul.f32 %v1606_v12, %v1289_v11 }
0x10d5   :  { %1296 = vrot.lane.b32.xlu2 %v1292_v55, %s1781_s7 }
0x10d6   :  { %1298 = vrot.lane.b32.xlu0 %v1293_v14, %s1781_s7 }
0x10dd   :  { %1271 = vrot.lane.b32.xlu2 %v1268_v15, %s1779_s29 }
0x112f   :  { %v1297_v16 = vpop.permute.xlu2 %1296  ;;  %v1270_v8 = vpop.permute.xlu1 %1269 }
0x1130   :  { %v1302_v17 = vadd.f32 %v1297_v16, %v1923_v43  ;;  %v1275_v23 = vadd.f32 %v1270_v8, %v1926_v44 }
0x1132   :  { %1607 = vtanh.f32 %v1302_v17  ;;  %v1277_v28 = vsub.f32 0.0, %v1275_v23 }
0x1134   :  { %v1279_v9 = vmul.f32 1.442695, %v1277_v28 }
0x1137   :  { %v1272_v27 = vpop.permute.xlu2 %1271 }
0x1138   :  { %v1608_v19 = vpop.eup %1607  ;;  %v1276_v30 = vadd.f32 %v1272_v27, %v1932_v51 }
0x1139   :  { %1310 = vrot.lane.b32.xlu0 %v1608_v19, %s1782_s15 }
0x113a   :  { %v1278_v43 = vsub.f32 0.0, %v1276_v30 }
0x113c   :  { %v1281_v31 = vmul.f32 1.442695, %v1278_v43 }
0x1148   :  { %v1299_v57 = vpop.permute.xlu0 %1298 }
0x1149   :  { %v1303_v20 = vadd.f32 %v1299_v57, %v1929_v48  ;;  %v1328_v48 = vld [vmem:[%s2180_s12] sm:$0xff]  ;;  %s1783_s12 = smov [#allocation11]  }
0x114a   :  { %1358 = vmatpush.msrb.mxu1 %v1328_v48  ;;  %s1370_s3 = sshll.u32 %s1783_s12, 4  ;;  %s1371_s3 = int_to_ptr.vmem [resolvable:$true] %s1370_s3 }
0x114b   :  { %1609 = vtanh.f32 %v1303_v20 }
0x114c   :  { %1611 = vpow2.f32 %v1279_v9 }
0x114d   :  { %1613 = vpow2.f32 %v1281_v31 }
0x1151   :  { %v1610_v22 = vpop.eup %1609 }
0x1152   :  { %1312 = vrot.lane.b32.xlu1 %v1610_v22, %s1782_s15  ;;  %v1612_v18 = vpop.eup %1611 }
0x1153   :  { %v1283_v44 = vadd.f32 1.0, %v1612_v18  ;;  %v1614_v21 = vpop.eup %1613 }
0x1154   :  { %v1284_v51 = vadd.f32 1.0, %v1614_v21 }
0x1155   :  { %1615 = vrcp.f32 %v1283_v44 }
0x1156   :  { %1617 = vrcp.f32 %v1284_v51 }
0x115b   :  { %v1616_v24 = vpop.eup %1615 }
0x115c   :  { %v1306_v35 = vsub.f32 1.0, %v1616_v24  ;;  %v1618_v36 = vpop.eup %1617  ;;  %v1324_v33 = vmul.f32 %v1616_v24, %v1320_v39 }
0x115d   :  { %v1307_v45 = vsub.f32 1.0, %v1618_v36  ;;  %v1325_v47 = vmul.f32 %v1618_v36, %v1321_v42 }
0x11ab   :  { %v1311_v34 = vpop.permute.xlu0 %1310 }
0x11ac   :  { %v1316_v13 = vmul.f32 %v1311_v34, %v1306_v35 }
0x11ae   :  { %v1326_v26 = vadd.f32 %v1324_v33, %v1316_v13 }
0x11b0   :  { %v1336_v37 = vrot.slane %v1326_v26, 7 }
0x11c4   :  { %v1313_v46 = vpop.permute.xlu1 %1312 }
0x11c5   :  { %v1317_v25 = vmul.f32 %v1313_v46, %v1307_v45 }
0x11c7   :  { %v1327_v49 = vadd.f32 %v1325_v47, %v1317_v25 }
0x11c9   :  { %v1337_v52 = vrot.slane %v1327_v49, 6 }
0x11cb   :  { %v1338_v53 = vsel %vm408_vm3, %v1337_v52, %v1336_v37 }
0x11cc   :  { %1339 = vrot.lane.b32.xlu2 %v1338_v53, %s1782_s15 }
0x1226   :  { %v1340_v54 = vpop.permute.xlu2 %1339 }
0x1227   :  { %1434 = vmatmul.msk.f32.vlgmr.msrb.gmra.mxu1 %vm159_vm2, %v1340_v54 }
0x12a4   :  { %v1360_v41 = vpop.f32.mrf.mxu1 }
0x12a5   :  { %v1361_v29 = vadd.f32 %v1458_v40, %v1360_v41 }
0x12a7   :  { %1364 = vst.msk [vmem:[#allocation11] sm:$0x3] %vm1363_vm4, %v1361_v29 }
0x12a8   :  { %1375 = dma.vmem_to_hbm [thread:$0]  %s1371_s3, 32, %s1373_s10, [#allocation4]  }
0x12a9   :  { %1769 = dma.done.wait [#allocation4], 32  }
0x12aa   :  { %1770 = vsyncadd [#allocation4], 4294967264 }
0x12ab   :  { %1380 = vsyncpa [#allocation3], 1 }
0x12ac   :  { %1381 = vsyncpa [#allocation6], 1 }
0x12ad   :  { %1382 = vsyncpa [#allocation9], 1 }
0x12ae   :  { %1383 = vsyncpa [#allocation4], 1 }

</bundles_post_ra>
